<compile_context>
chip_gen: v7x
topology: tpu7x:2x2x1
jax: 0.10.0
libtpu: 0.0.40
codegen_flags: <defaults>
</compile_context>

<pallas_src>
import functools

import jax
import jax.numpy as jnp
from jax import lax
from jax.experimental import pallas as pl
from jax.experimental.pallas import tpu as pltpu

NUM_INPUTS = 4
NUM_FILTS = 256
DEPTH = 4


def _round_up(x, m):
    return ((x + m - 1) // m) * m


def _tensorcores_per_chip():
    # v7x packs 2 TensorCores per chip (one jax device); v5e/v6e have 1.
    try:
        kind = jax.devices()[0].device_kind.lower()
    except Exception:
        return 1
    return 2 if "7" in kind else 1


def _choose_tiling(B, *, chunk=256, max_tile_b=1024, num_tc=1):
    """Returns (tile_b, chunk_eff, B_pad) with B_pad % tile_b == 0 and
    tile_b % chunk_eff == 0, all multiples of 8 (sublane constraint)."""
    B8 = _round_up(max(B, 1), 8)
    if B8 <= chunk:
        return B8, B8, B8                       # single tile, single chunk
    Bc = _round_up(B8, chunk)
    tile_b = min(Bc, max_tile_b)
    if num_tc > 1:
        # Keep >= num_tc grid steps so every TensorCore gets work under
        # dimension_semantics=("parallel",); never collapse to grid=1 on v7x.
        tile_b = min(tile_b, max(chunk, (Bc // num_tc) // chunk * chunk))
    B_pad = _round_up(Bc, tile_b)
    return tile_b, chunk, B_pad


def _residual_fcnet_kernel(x_ref, w_in_ref, b_in_ref,
                           w1_ref, b1_ref, w2_ref, b2_ref,
                           o_ref, *, depth, nin, chunk, n_chunks):
    # ---- Input projection (K = nin = 4): VPU rank-1 accumulate + bias + ReLU ----
    # A K=4 MXU matmul costs nearly the same vmatmul cadence as a K=256 one; doing it
    # as 4 broadcast-mul/adds on the (idle) VPU keeps the MXU for the residual blocks.
    def proj_chunk(c, carry):
        r0 = pl.multiple_of(c * chunk, chunk)
        xb = x_ref[pl.ds(r0, chunk), :]                       # (chunk, nin) f32
        acc = xb[:, 0:1] * w_in_ref[0:1, :]                   # (chunk, nf)
        for k in range(1, nin):
            acc = acc + xb[:, k:k + 1] * w_in_ref[k:k + 1, :]
        o_ref[pl.ds(r0, chunk), :] = jnp.maximum(acc + b_in_ref[...], 0.0)
        return carry

    lax.fori_loop(0, n_chunks, proj_chunk, 0, unroll=True)

    # ---- depth x ResLayer:  h += ReLU(W2 @ ReLU(W1 @ h + b1) + b2) ----
    # TODO(synk): nn.Dropout is identity in eval mode; training-mode dropout (p=0.5) is
    # not implemented here (would use pltpu.prng_seed / pltpu.stateful_bernoulli).
    for d in range(depth):            # static unroll -> static-index weight views
        def layer_chunk(c, carry, d=d):
            r0 = pl.multiple_of(c * chunk, chunk)
            hb = o_ref[pl.ds(r0, chunk), :]                   # (chunk, nf) f32
            y = jnp.dot(hb.astype(jnp.bfloat16), w1_ref[d],
                        preferred_element_type=jnp.float32)
            y = jnp.maximum(y + b1_ref[d:d + 1, :], 0.0)
            y = jnp.dot(y.astype(jnp.bfloat16), w2_ref[d],
                        preferred_element_type=jnp.float32)
            y = jnp.maximum(y + b2_ref[d:d + 1, :], 0.0)
            o_ref[pl.ds(r0, chunk), :] = hb + y               # residual add
            return carry

        lax.fori_loop(0, n_chunks, layer_chunk, 0, unroll=True)


def residual_fcnet(x, params, *, chunk=256, max_tile_b=1024):
    """x: [B, num_inputs] float32 -> [B, num_filts] float32 (eval-mode forward)."""
    w_in, b_in, w1, b1, w2, b2 = params
    B, nin = x.shape
    nf = w_in.shape[1]
    depth = w1.shape[0]

    # Residual-block weights go through the MXU in bf16 (f32 accumulation).
    w1 = w1.astype(jnp.bfloat16)
    w2 = w2.astype(jnp.bfloat16)

    tile_b, chunk_eff, B_pad = _choose_tiling(
        B, chunk=chunk, max_tile_b=max_tile_b, num_tc=_tensorcores_per_chip())
    if B_pad != B:
        x = jnp.pad(x, ((0, B_pad - B), (0, 0)))

    kernel = functools.partial(
        _residual_fcnet_kernel, depth=depth, nin=nin,
        chunk=chunk_eff, n_chunks=tile_b // chunk_eff)

    out = pl.pallas_call(
        kernel,
        out_shape=jax.ShapeDtypeStruct((B_pad, nf), jnp.float32),
        grid_spec=pltpu.PrefetchScalarGridSpec(
            num_scalar_prefetch=0,
            grid=(B_pad // tile_b,),
            in_specs=[
                pl.BlockSpec((tile_b, nin), lambda i: (i, 0)),        # x tile
                pl.BlockSpec((nin, nf), lambda i: (0, 0)),            # w_in (f32, tiny)
                pl.BlockSpec((1, nf), lambda i: (0, 0)),              # b_in (f32)
                pl.BlockSpec((depth, nf, nf), lambda i: (0, 0, 0)),   # W1 stack (bf16)
                pl.BlockSpec((depth, nf), lambda i: (0, 0)),          # b1 (f32)
                pl.BlockSpec((depth, nf, nf), lambda i: (0, 0, 0)),   # W2 stack (bf16)
                pl.BlockSpec((depth, nf), lambda i: (0, 0)),          # b2 (f32)
            ],
            out_specs=pl.BlockSpec((tile_b, nf), lambda i: (i, 0)),   # doubles as h acc
        ),
        compiler_params=pltpu.CompilerParams(
            dimension_semantics=("parallel",),
            vmem_limit_bytes=64 * 1024 * 1024),
    )(x, w_in, b_in, w1, b1, w2, b2)

    return out[:B]


def init_params(key, num_inputs=NUM_INPUTS, num_filts=NUM_FILTS, depth=DEPTH):
    """PyTorch nn.Linear default init (U[-1/sqrt(fan_in), +1/sqrt(fan_in)]).
    Weights stored as [in_features, out_features], all float32."""
    ks = jax.random.split(key, 1 + 2 * depth)

    def lin(k, fan_in, fan_out):
        kw, kb = jax.random.split(k)
        bound = 1.0 / (fan_in ** 0.5)
        w = jax.random.uniform(kw, (fan_in, fan_out), jnp.float32, -bound, bound)
        b = jax.random.uniform(kb, (fan_out,), jnp.float32, -bound, bound)
        return w, b

    w_in, b_in = lin(ks[0], num_inputs, num_filts)
    w1s, b1s, w2s, b2s = [], [], [], []
    for d in range(depth):
        w1, b1 = lin(ks[1 + 2 * d], num_filts, num_filts)
        w2, b2 = lin(ks[2 + 2 * d], num_filts, num_filts)
        w1s.append(w1); b1s.append(b1); w2s.append(w2); b2s.append(b2)

    return (w_in, b_in.reshape(1, num_filts),
            jnp.stack(w1s), jnp.stack(b1s),
            jnp.stack(w2s), jnp.stack(b2s))


def residual_fcnet_ref_f32(x, params):
    """Exact f32 forward of the PyTorch ResidualFCNet (eval mode)."""
    w_in, b_in, w1, b1, w2, b2 = params
    h = jnp.maximum(x @ w_in + b_in, 0.0)
    for d in range(w1.shape[0]):
        y = jnp.maximum(h @ w1[d] + b1[d], 0.0)
        y = jnp.maximum(y @ w2[d] + b2[d], 0.0)
        h = h + y
    return h


def residual_fcnet_ref_bf16(x, params):
    """Reference mirroring the kernel numerics (bf16 MXU inputs, f32 accumulation)."""
    w_in, b_in, w1, b1, w2, b2 = params
    h = jnp.maximum(x @ w_in + b_in, 0.0)
    for d in range(w1.shape[0]):
        y = jnp.dot(h.astype(jnp.bfloat16), w1[d].astype(jnp.bfloat16),
                    preferred_element_type=jnp.float32)
        y = jnp.maximum(y + b1[d], 0.0)
        y = jnp.dot(y.astype(jnp.bfloat16), w2[d].astype(jnp.bfloat16),
                    preferred_element_type=jnp.float32)
        y = jnp.maximum(y + b2[d], 0.0)
        h = h + y
    return h


if __name__ == "__main__":
    key = jax.random.PRNGKey(0)
    kx, kp = jax.random.split(key)

    B = 16  # small test batch; x: [16, 4]
    x = jax.random.normal(kx, (B, NUM_INPUTS), jnp.float32)
    params = init_params(kp)

    out = jax.block_until_ready(residual_fcnet(x, params))
    assert out.shape == (B, NUM_FILTS)

    def rel(a, b):
        return float(jnp.max(jnp.abs(a - b)) / (jnp.max(jnp.abs(b)) + 1e-6))

    # Tight check vs. a reference matching the kernel's bf16/f32 numerics (structure).
    err_bf16 = rel(out, residual_fcnet_ref_bf16(x, params))
    # Loose check vs. the true float32 ResidualFCNet forward (non-circular).
    err_f32 = rel(out, residual_fcnet_ref_f32(x, params))
    assert err_bf16 < 5e-3, f"kernel vs bf16-matched ref: rel_err={err_bf16}"
    assert err_f32 < 5e-2, f"kernel vs f32 ref: rel_err={err_f32}"

    print("KERNEL_OK")
</pallas_src>

<mosaic_0001>
module attributes {stable_mosaic.version = 11 : i64} {
  func.func @_residual_fcnet_kernel(%arg0: i32, %arg1: memref<16x4xf32, #tpu.memory_space<vmem>>, %arg2: memref<4x256xf32, #tpu.memory_space<vmem>>, %arg3: memref<1x256xf32, #tpu.memory_space<vmem>>, %arg4: memref<4x256x256xbf16, #tpu.memory_space<vmem>>, %arg5: memref<4x256xf32, #tpu.memory_space<vmem>>, %arg6: memref<4x256x256xbf16, #tpu.memory_space<vmem>>, %arg7: memref<4x256xf32, #tpu.memory_space<vmem>>, %arg8: memref<16x256xf32, #tpu.memory_space<vmem>>) attributes {dimension_semantics = [#tpu.dimension_semantics<parallel>], iteration_bounds = array<i64: 1>, scalar_prefetch = 0 : i64, scratch_operands = 0 : i64, tpu.core_type = #tpu.core_type<tc>, window_params = [{transform_indices = @transform_0, window_bounds = array<i64: 16, 4>}, {pipeline_mode = #tpu.pipeline_mode<synchronous>, transform_indices = @transform_1, window_bounds = array<i64: 4, 256>}, {pipeline_mode = #tpu.pipeline_mode<synchronous>, transform_indices = @transform_2, window_bounds = array<i64: 1, 256>}, {pipeline_mode = #tpu.pipeline_mode<synchronous>, transform_indices = @transform_3, window_bounds = array<i64: 4, 256, 256>}, {pipeline_mode = #tpu.pipeline_mode<synchronous>, transform_indices = @transform_4, window_bounds = array<i64: 4, 256>}, {pipeline_mode = #tpu.pipeline_mode<synchronous>, transform_indices = @transform_5, window_bounds = array<i64: 4, 256, 256>}, {pipeline_mode = #tpu.pipeline_mode<synchronous>, transform_indices = @transform_6, window_bounds = array<i64: 4, 256>}, {transform_indices = @transform_7, window_bounds = array<i64: 16, 256>}]} {
    %c0_i32 = arith.constant 0 : i32
    %c16_i32 = arith.constant 16 : i32
    %0 = arith.muli %c0_i32, %c16_i32 : i32
    %1 = tpu.assume_multiple %0, 16 : i32
    %2 = arith.index_cast %1 : i32 to index
    %c0 = arith.constant 0 : index
    %3 = vector.load %arg1[%2, %c0] : memref<16x4xf32, #tpu.memory_space<vmem>>, vector<16x4xf32>
    %4 = vector.extract_strided_slice %3 {offsets = [0, 0], sizes = [16, 1], strides = [1, 1]} : vector<16x4xf32> to vector<16x1xf32>
    %c0_0 = arith.constant 0 : index
    %c0_1 = arith.constant 0 : index
    %5 = vector.load %arg2[%c0_0, %c0_1] : memref<4x256xf32, #tpu.memory_space<vmem>>, vector<1x256xf32>
    %6 = vector.broadcast %4 : vector<16x1xf32> to vector<16x256xf32>
    %7 = vector.broadcast %5 : vector<1x256xf32> to vector<16x256xf32>
    %8 = arith.mulf %6, %7 : vector<16x256xf32>
    %9 = vector.extract_strided_slice %3 {offsets = [0, 1], sizes = [16, 1], strides = [1, 1]} : vector<16x4xf32> to vector<16x1xf32>
    %c1 = arith.constant 1 : index
    %c0_2 = arith.constant 0 : index
    %10 = vector.load %arg2[%c1, %c0_2] : memref<4x256xf32, #tpu.memory_space<vmem>>, vector<1x256xf32>
    %11 = vector.broadcast %9 : vector<16x1xf32> to vector<16x256xf32>
    %12 = vector.broadcast %10 : vector<1x256xf32> to vector<16x256xf32>
    %13 = arith.mulf %11, %12 : vector<16x256xf32>
    %14 = arith.addf %8, %13 : vector<16x256xf32>
    %15 = vector.extract_strided_slice %3 {offsets = [0, 2], sizes = [16, 1], strides = [1, 1]} : vector<16x4xf32> to vector<16x1xf32>
    %c2 = arith.constant 2 : index
    %c0_3 = arith.constant 0 : index
    %16 = vector.load %arg2[%c2, %c0_3] : memref<4x256xf32, #tpu.memory_space<vmem>>, vector<1x256xf32>
    %17 = vector.broadcast %15 : vector<16x1xf32> to vector<16x256xf32>
    %18 = vector.broadcast %16 : vector<1x256xf32> to vector<16x256xf32>
    %19 = arith.mulf %17, %18 : vector<16x256xf32>
    %20 = arith.addf %14, %19 : vector<16x256xf32>
    %21 = vector.extract_strided_slice %3 {offsets = [0, 3], sizes = [16, 1], strides = [1, 1]} : vector<16x4xf32> to vector<16x1xf32>
    %c3 = arith.constant 3 : index
    %c0_4 = arith.constant 0 : index
    %22 = vector.load %arg2[%c3, %c0_4] : memref<4x256xf32, #tpu.memory_space<vmem>>, vector<1x256xf32>
    %23 = vector.broadcast %21 : vector<16x1xf32> to vector<16x256xf32>
    %24 = vector.broadcast %22 : vector<1x256xf32> to vector<16x256xf32>
    %25 = arith.mulf %23, %24 : vector<16x256xf32>
    %26 = arith.addf %20, %25 : vector<16x256xf32>
    %c0_5 = arith.constant 0 : index
    %c0_6 = arith.constant 0 : index
    %27 = vector.load %arg3[%c0_5, %c0_6] : memref<1x256xf32, #tpu.memory_space<vmem>>, vector<1x256xf32>
    %28 = vector.broadcast %27 : vector<1x256xf32> to vector<16x256xf32>
    %29 = arith.addf %26, %28 : vector<16x256xf32>
    %cst = arith.constant 0.000000e+00 : f32
    %30 = vector.broadcast %cst : f32 to vector<16x256xf32>
    %31 = arith.maximumf %29, %30 : vector<16x256xf32>
    %32 = arith.index_cast %1 : i32 to index
    %c0_7 = arith.constant 0 : index
    %33 = vector.load %arg8[%32, %c0_7] : memref<16x256xf32, #tpu.memory_space<vmem>>, vector<16x256xf32>
    tpu.vector_store %arg8[%32, %c0_7], %31 {strides = array<i32>} : memref<16x256xf32, #tpu.memory_space<vmem>>, vector<16x256xf32>,
    %c1_i32 = arith.constant 1 : i32
    %c0_i32_8 = arith.constant 0 : i32
    %c16_i32_9 = arith.constant 16 : i32
    %34 = arith.muli %c0_i32_8, %c16_i32_9 : i32
    %35 = tpu.assume_multiple %34, 16 : i32
    %36 = arith.index_cast %35 : i32 to index
    %c0_10 = arith.constant 0 : index
    %37 = vector.load %arg8[%36, %c0_10] : memref<16x256xf32, #tpu.memory_space<vmem>>, vector<16x256xf32>
    %38 = arith.truncf %37 : vector<16x256xf32> to vector<16x256xbf16>
    %c0_11 = arith.constant 0 : index
    %c0_12 = arith.constant 0 : index
    %c0_13 = arith.constant 0 : index
    %39 = vector.load %arg4[%c0_11, %c0_12, %c0_13] : memref<4x256x256xbf16, #tpu.memory_space<vmem>>, vector<1x256x256xbf16>
    %40 = vector.shape_cast %39 : vector<1x256x256xbf16> to vector<256x256xbf16>
    %cst_14 = arith.constant dense<0.000000e+00> : vector<16x256xf32>
    %41 = tpu.matmul %38, %40, %cst_14 {dimension_numbers = #tpu.dot_dimension_numbers<[1], [0], [0], [1], [0, 0, 1, 1], [], []>} : vector<16x256xbf16>, vector<256x256xbf16>, vector<16x256xf32> -> vector<16x256xf32>
    %c0_15 = arith.constant 0 : index
    %c0_16 = arith.constant 0 : index
    %42 = vector.load %arg5[%c0_15, %c0_16] : memref<4x256xf32, #tpu.memory_space<vmem>>, vector<1x256xf32>
    %43 = vector.broadcast %42 : vector<1x256xf32> to vector<16x256xf32>
    %44 = arith.addf %41, %43 : vector<16x256xf32>
    %cst_17 = arith.constant 0.000000e+00 : f32
    %45 = vector.broadcast %cst_17 : f32 to vector<16x256xf32>
    %46 = arith.maximumf %44, %45 : vector<16x256xf32>
    %47 = arith.truncf %46 : vector<16x256xf32> to vector<16x256xbf16>
    %c0_18 = arith.constant 0 : index
    %c0_19 = arith.constant 0 : index
    %c0_20 = arith.constant 0 : index
    %48 = vector.load %arg6[%c0_18, %c0_19, %c0_20] : memref<4x256x256xbf16, #tpu.memory_space<vmem>>, vector<1x256x256xbf16>
    %49 = vector.shape_cast %48 : vector<1x256x256xbf16> to vector<256x256xbf16>
    %cst_21 = arith.constant dense<0.000000e+00> : vector<16x256xf32>
    %50 = tpu.matmul %47, %49, %cst_21 {dimension_numbers = #tpu.dot_dimension_numbers<[1], [0], [0], [1], [0, 0, 1, 1], [], []>} : vector<16x256xbf16>, vector<256x256xbf16>, vector<16x256xf32> -> vector<16x256xf32>
    %c0_22 = arith.constant 0 : index
    %c0_23 = arith.constant 0 : index
    %51 = vector.load %arg7[%c0_22, %c0_23] : memref<4x256xf32, #tpu.memory_space<vmem>>, vector<1x256xf32>
    %52 = vector.broadcast %51 : vector<1x256xf32> to vector<16x256xf32>
    %53 = arith.addf %50, %52 : vector<16x256xf32>
    %cst_24 = arith.constant 0.000000e+00 : f32
    %54 = vector.broadcast %cst_24 : f32 to vector<16x256xf32>
    %55 = arith.maximumf %53, %54 : vector<16x256xf32>
    %56 = arith.addf %37, %55 : vector<16x256xf32>
    %57 = arith.index_cast %35 : i32 to index
    %c0_25 = arith.constant 0 : index
    %58 = vector.load %arg8[%57, %c0_25] : memref<16x256xf32, #tpu.memory_space<vmem>>, vector<16x256xf32>
    tpu.vector_store %arg8[%57, %c0_25], %56 {strides = array<i32>} : memref<16x256xf32, #tpu.memory_space<vmem>>, vector<16x256xf32>,
    %c1_i32_26 = arith.constant 1 : i32
    %c0_i32_27 = arith.constant 0 : i32
    %c16_i32_28 = arith.constant 16 : i32
    %59 = arith.muli %c0_i32_27, %c16_i32_28 : i32
    %60 = tpu.assume_multiple %59, 16 : i32
    %61 = arith.index_cast %60 : i32 to index
    %c0_29 = arith.constant 0 : index
    %62 = vector.load %arg8[%61, %c0_29] : memref<16x256xf32, #tpu.memory_space<vmem>>, vector<16x256xf32>
    %63 = arith.truncf %62 : vector<16x256xf32> to vector<16x256xbf16>
    %c1_30 = arith.constant 1 : index
    %c0_31 = arith.constant 0 : index
    %c0_32 = arith.constant 0 : index
    %64 = vector.load %arg4[%c1_30, %c0_31, %c0_32] : memref<4x256x256xbf16, #tpu.memory_space<vmem>>, vector<1x256x256xbf16>
    %65 = vector.shape_cast %64 : vector<1x256x256xbf16> to vector<256x256xbf16>
    %cst_33 = arith.constant dense<0.000000e+00> : vector<16x256xf32>
    %66 = tpu.matmul %63, %65, %cst_33 {dimension_numbers = #tpu.dot_dimension_numbers<[1], [0], [0], [1], [0, 0, 1, 1], [], []>} : vector<16x256xbf16>, vector<256x256xbf16>, vector<16x256xf32> -> vector<16x256xf32>
    %c1_34 = arith.constant 1 : index
    %c0_35 = arith.constant 0 : index
    %67 = vector.load %arg5[%c1_34, %c0_35] : memref<4x256xf32, #tpu.memory_space<vmem>>, vector<1x256xf32>
    %68 = vector.broadcast %67 : vector<1x256xf32> to vector<16x256xf32>
    %69 = arith.addf %66, %68 : vector<16x256xf32>
    %cst_36 = arith.constant 0.000000e+00 : f32
    %70 = vector.broadcast %cst_36 : f32 to vector<16x256xf32>
    %71 = arith.maximumf %69, %70 : vector<16x256xf32>
    %72 = arith.truncf %71 : vector<16x256xf32> to vector<16x256xbf16>
    %c1_37 = arith.constant 1 : index
    %c0_38 = arith.constant 0 : index
    %c0_39 = arith.constant 0 : index
    %73 = vector.load %arg6[%c1_37, %c0_38, %c0_39] : memref<4x256x256xbf16, #tpu.memory_space<vmem>>, vector<1x256x256xbf16>
    %74 = vector.shape_cast %73 : vector<1x256x256xbf16> to vector<256x256xbf16>
    %cst_40 = arith.constant dense<0.000000e+00> : vector<16x256xf32>
    %75 = tpu.matmul %72, %74, %cst_40 {dimension_numbers = #tpu.dot_dimension_numbers<[1], [0], [0], [1], [0, 0, 1, 1], [], []>} : vector<16x256xbf16>, vector<256x256xbf16>, vector<16x256xf32> -> vector<16x256xf32>
    %c1_41 = arith.constant 1 : index
    %c0_42 = arith.constant 0 : index
    %76 = vector.load %arg7[%c1_41, %c0_42] : memref<4x256xf32, #tpu.memory_space<vmem>>, vector<1x256xf32>
    %77 = vector.broadcast %76 : vector<1x256xf32> to vector<16x256xf32>
    %78 = arith.addf %75, %77 : vector<16x256xf32>
    %cst_43 = arith.constant 0.000000e+00 : f32
    %79 = vector.broadcast %cst_43 : f32 to vector<16x256xf32>
    %80 = arith.maximumf %78, %79 : vector<16x256xf32>
    %81 = arith.addf %62, %80 : vector<16x256xf32>
    %82 = arith.index_cast %60 : i32 to index
    %c0_44 = arith.constant 0 : index
    %83 = vector.load %arg8[%82, %c0_44] : memref<16x256xf32, #tpu.memory_space<vmem>>, vector<16x256xf32>
    tpu.vector_store %arg8[%82, %c0_44], %81 {strides = array<i32>} : memref<16x256xf32, #tpu.memory_space<vmem>>, vector<16x256xf32>,
    %c1_i32_45 = arith.constant 1 : i32
    %c0_i32_46 = arith.constant 0 : i32
    %c16_i32_47 = arith.constant 16 : i32
    %84 = arith.muli %c0_i32_46, %c16_i32_47 : i32
    %85 = tpu.assume_multiple %84, 16 : i32
    %86 = arith.index_cast %85 : i32 to index
    %c0_48 = arith.constant 0 : index
    %87 = vector.load %arg8[%86, %c0_48] : memref<16x256xf32, #tpu.memory_space<vmem>>, vector<16x256xf32>
    %88 = arith.truncf %87 : vector<16x256xf32> to vector<16x256xbf16>
    %c2_49 = arith.constant 2 : index
    %c0_50 = arith.constant 0 : index
    %c0_51 = arith.constant 0 : index
    %89 = vector.load %arg4[%c2_49, %c0_50, %c0_51] : memref<4x256x256xbf16, #tpu.memory_space<vmem>>, vector<1x256x256xbf16>
    %90 = vector.shape_cast %89 : vector<1x256x256xbf16> to vector<256x256xbf16>
    %cst_52 = arith.constant dense<0.000000e+00> : vector<16x256xf32>
    %91 = tpu.matmul %88, %90, %cst_52 {dimension_numbers = #tpu.dot_dimension_numbers<[1], [0], [0], [1], [0, 0, 1, 1], [], []>} : vector<16x256xbf16>, vector<256x256xbf16>, vector<16x256xf32> -> vector<16x256xf32>
    %c2_53 = arith.constant 2 : index
    %c0_54 = arith.constant 0 : index
    %92 = vector.load %arg5[%c2_53, %c0_54] : memref<4x256xf32, #tpu.memory_space<vmem>>, vector<1x256xf32>
    %93 = vector.broadcast %92 : vector<1x256xf32> to vector<16x256xf32>
    %94 = arith.addf %91, %93 : vector<16x256xf32>
    %cst_55 = arith.constant 0.000000e+00 : f32
    %95 = vector.broadcast %cst_55 : f32 to vector<16x256xf32>
    %96 = arith.maximumf %94, %95 : vector<16x256xf32>
    %97 = arith.truncf %96 : vector<16x256xf32> to vector<16x256xbf16>
    %c2_56 = arith.constant 2 : index
    %c0_57 = arith.constant 0 : index
    %c0_58 = arith.constant 0 : index
    %98 = vector.load %arg6[%c2_56, %c0_57, %c0_58] : memref<4x256x256xbf16, #tpu.memory_space<vmem>>, vector<1x256x256xbf16>
    %99 = vector.shape_cast %98 : vector<1x256x256xbf16> to vector<256x256xbf16>
    %cst_59 = arith.constant dense<0.000000e+00> : vector<16x256xf32>
    %100 = tpu.matmul %97, %99, %cst_59 {dimension_numbers = #tpu.dot_dimension_numbers<[1], [0], [0], [1], [0, 0, 1, 1], [], []>} : vector<16x256xbf16>, vector<256x256xbf16>, vector<16x256xf32> -> vector<16x256xf32>
    %c2_60 = arith.constant 2 : index
    %c0_61 = arith.constant 0 : index
    %101 = vector.load %arg7[%c2_60, %c0_61] : memref<4x256xf32, #tpu.memory_space<vmem>>, vector<1x256xf32>
    %102 = vector.broadcast %101 : vector<1x256xf32> to vector<16x256xf32>
    %103 = arith.addf %100, %102 : vector<16x256xf32>
    %cst_62 = arith.constant 0.000000e+00 : f32
    %104 = vector.broadcast %cst_62 : f32 to vector<16x256xf32>
    %105 = arith.maximumf %103, %104 : vector<16x256xf32>
    %106 = arith.addf %87, %105 : vector<16x256xf32>
    %107 = arith.index_cast %85 : i32 to index
    %c0_63 = arith.constant 0 : index
    %108 = vector.load %arg8[%107, %c0_63] : memref<16x256xf32, #tpu.memory_space<vmem>>, vector<16x256xf32>
    tpu.vector_store %arg8[%107, %c0_63], %106 {strides = array<i32>} : memref<16x256xf32, #tpu.memory_space<vmem>>, vector<16x256xf32>,
    %c1_i32_64 = arith.constant 1 : i32
    %c0_i32_65 = arith.constant 0 : i32
    %c16_i32_66 = arith.constant 16 : i32
    %109 = arith.muli %c0_i32_65, %c16_i32_66 : i32
    %110 = tpu.assume_multiple %109, 16 : i32
    %111 = arith.index_cast %110 : i32 to index
    %c0_67 = arith.constant 0 : index
    %112 = vector.load %arg8[%111, %c0_67] : memref<16x256xf32, #tpu.memory_space<vmem>>, vector<16x256xf32>
    %113 = arith.truncf %112 : vector<16x256xf32> to vector<16x256xbf16>
    %c3_68 = arith.constant 3 : index
    %c0_69 = arith.constant 0 : index
    %c0_70 = arith.constant 0 : index
    %114 = vector.load %arg4[%c3_68, %c0_69, %c0_70] : memref<4x256x256xbf16, #tpu.memory_space<vmem>>, vector<1x256x256xbf16>
    %115 = vector.shape_cast %114 : vector<1x256x256xbf16> to vector<256x256xbf16>
    %cst_71 = arith.constant dense<0.000000e+00> : vector<16x256xf32>
    %116 = tpu.matmul %113, %115, %cst_71 {dimension_numbers = #tpu.dot_dimension_numbers<[1], [0], [0], [1], [0, 0, 1, 1], [], []>} : vector<16x256xbf16>, vector<256x256xbf16>, vector<16x256xf32> -> vector<16x256xf32>
    %c3_72 = arith.constant 3 : index
    %c0_73 = arith.constant 0 : index
    %117 = vector.load %arg5[%c3_72, %c0_73] : memref<4x256xf32, #tpu.memory_space<vmem>>, vector<1x256xf32>
    %118 = vector.broadcast %117 : vector<1x256xf32> to vector<16x256xf32>
    %119 = arith.addf %116, %118 : vector<16x256xf32>
    %cst_74 = arith.constant 0.000000e+00 : f32
    %120 = vector.broadcast %cst_74 : f32 to vector<16x256xf32>
    %121 = arith.maximumf %119, %120 : vector<16x256xf32>
    %122 = arith.truncf %121 : vector<16x256xf32> to vector<16x256xbf16>
    %c3_75 = arith.constant 3 : index
    %c0_76 = arith.constant 0 : index
    %c0_77 = arith.constant 0 : index
    %123 = vector.load %arg6[%c3_75, %c0_76, %c0_77] : memref<4x256x256xbf16, #tpu.memory_space<vmem>>, vector<1x256x256xbf16>
    %124 = vector.shape_cast %123 : vector<1x256x256xbf16> to vector<256x256xbf16>
    %cst_78 = arith.constant dense<0.000000e+00> : vector<16x256xf32>
    %125 = tpu.matmul %122, %124, %cst_78 {dimension_numbers = #tpu.dot_dimension_numbers<[1], [0], [0], [1], [0, 0, 1, 1], [], []>} : vector<16x256xbf16>, vector<256x256xbf16>, vector<16x256xf32> -> vector<16x256xf32>
    %c3_79 = arith.constant 3 : index
    %c0_80 = arith.constant 0 : index
    %126 = vector.load %arg7[%c3_79, %c0_80] : memref<4x256xf32, #tpu.memory_space<vmem>>, vector<1x256xf32>
    %127 = vector.broadcast %126 : vector<1x256xf32> to vector<16x256xf32>
    %128 = arith.addf %125, %127 : vector<16x256xf32>
    %cst_81 = arith.constant 0.000000e+00 : f32
    %129 = vector.broadcast %cst_81 : f32 to vector<16x256xf32>
    %130 = arith.maximumf %128, %129 : vector<16x256xf32>
    %131 = arith.addf %112, %130 : vector<16x256xf32>
    %132 = arith.index_cast %110 : i32 to index
    %c0_82 = arith.constant 0 : index
    %133 = vector.load %arg8[%132, %c0_82] : memref<16x256xf32, #tpu.memory_space<vmem>>, vector<16x256xf32>
    tpu.vector_store %arg8[%132, %c0_82], %131 {strides = array<i32>} : memref<16x256xf32, #tpu.memory_space<vmem>>, vector<16x256xf32>,
    %c1_i32_83 = arith.constant 1 : i32
    return
  }
  func.func @transform_0(%arg0: i32) -> (i32, i32) {
    %c0_i32 = arith.constant 0 : i32
    %c0_i32_0 = arith.constant 0 : i32
    return %arg0, %c0_i32 : i32, i32
  }
  func.func @transform_1(%arg0: i32) -> (i32, i32) {
    %c0_i32 = arith.constant 0 : i32
    %c0_i32_0 = arith.constant 0 : i32
    %c0_i32_1 = arith.constant 0 : i32
    return %c0_i32, %c0_i32_0 : i32, i32
  }
  func.func @transform_2(%arg0: i32) -> (i32, i32) {
    %c0_i32 = arith.constant 0 : i32
    %c0_i32_0 = arith.constant 0 : i32
    %c0_i32_1 = arith.constant 0 : i32
    return %c0_i32, %c0_i32_0 : i32, i32
  }
  func.func @transform_3(%arg0: i32) -> (i32, i32, i32) {
    %c0_i32 = arith.constant 0 : i32
    %c0_i32_0 = arith.constant 0 : i32
    %c0_i32_1 = arith.constant 0 : i32
    %c0_i32_2 = arith.constant 0 : i32
    return %c0_i32, %c0_i32_0, %c0_i32_1 : i32, i32, i32
  }
  func.func @transform_4(%arg0: i32) -> (i32, i32) {
    %c0_i32 = arith.constant 0 : i32
    %c0_i32_0 = arith.constant 0 : i32
    %c0_i32_1 = arith.constant 0 : i32
    return %c0_i32, %c0_i32_0 : i32, i32
  }
  func.func @transform_5(%arg0: i32) -> (i32, i32, i32) {
    %c0_i32 = arith.constant 0 : i32
    %c0_i32_0 = arith.constant 0 : i32
    %c0_i32_1 = arith.constant 0 : i32
    %c0_i32_2 = arith.constant 0 : i32
    return %c0_i32, %c0_i32_0, %c0_i32_1 : i32, i32, i32
  }
  func.func @transform_6(%arg0: i32) -> (i32, i32) {
    %c0_i32 = arith.constant 0 : i32
    %c0_i32_0 = arith.constant 0 : i32
    %c0_i32_1 = arith.constant 0 : i32
    return %c0_i32, %c0_i32_0 : i32, i32
  }
  func.func @transform_7(%arg0: i32) -> (i32, i32) {
    %c0_i32 = arith.constant 0 : i32
    %c0_i32_0 = arith.constant 0 : i32
    return %arg0, %c0_i32 : i32, i32
  }
}

</mosaic_0001>

<bundles_post_ra>
// kernel: tpu_custom_call.1
= control target key start
LH: loop header
LB: loop body
LE: loop exit
PB: predicated region body
PF: predicated region fallthrough
CT: control target
= control target key end

     0   :  { %12 = vsyncpa [#allocation3], 0  ;;  %s3459_s0 = inlined_call_operand.hbm [shape: f32[16,4], index: 0, kind: input, shape index: {}]   ;;  %s3460_s1 = inlined_call_operand.hbm [shape: f32[4,256], index: 1, kind: input, shape index: {}]   ;;  %s3461_s2 = inlined_call_operand.hbm [shape: f32[1,256], index: 2, kind: input, shape index: {}]   ;;  %s3462_s3 = inlined_call_operand.hbm [shape: bf16[4,256,256], index: 3, kind: input, shape index: {}]   ;;  %s3463_s4 = inlined_call_operand.hbm [shape: f32[4,256], index: 4, kind: input, shape index: {}]   ;;  %s3464_s5 = inlined_call_operand.hbm [shape: bf16[4,256,256], index: 5, kind: input, shape index: {}]   ;;  %s3465_s6 = inlined_call_operand.hbm [shape: f32[4,256], index: 6, kind: input, shape index: {}]   ;;  %s3466_s7 = inlined_call_operand.hbm [shape: f32[16,256], index: 7, kind: output, shape index: {}]  }
   0x1   :  { %13 = vsyncpa [#allocation6], 0 }
   0x2   :  { %14 = vsyncpa [#allocation9], 0 }
   0x3   :  { %15 = vsyncpa [#allocation12], 0 }
   0x4   :  { %16 = vsyncpa [#allocation4], 0  ;;  %s3208_s24 = smov [#allocation5]   ;;  %s3022_s28 = scalar_lea.hbm %s3460_s1, 128 }
   0x5   :  { %s35_s25 = sshll.u32 %s3208_s24, 4  ;;  %p3023_p0 = scmp.ne.s32.totalorder %s3460_s1, %s3022_s28  ;;  %s36_s25 = int_to_ptr.vmem [resolvable:$true] %s35_s25 }
   0x6   :  { %p3026_p1 = scmp.lt.u32.totalorder %s3022_s28, %s3460_s1 }
   0x8   :  { %p3028_p2 = pnand %p3026_p1, %p3023_p0 }
   0xa   :  { %3031 = shalt.err (!%p3028_p2)
}
   0xb   :  { %s3032_s10 = scalar_lea.vmem %s36_s25, 128  ;;  %p3037_p4 = scmp.lt.s32.totalorder %s36_s25, %s36_s25 }
   0xc   :  { %p3033_p3 = scmp.ne.s32.totalorder %s36_s25, %s3032_s10  ;;  %p3038_p5 = scmp.lt.s32.totalorder %s3032_s10, %s3032_s10 }
   0xe   :  { %p3039_p6 = por %p3038_p5, %p3037_p4 }
  0x10   :  { %p3040_p7 = pnand %p3039_p6, %p3033_p3 }
  0x12   :  { %3043 = shalt.err (!%p3040_p7)
}
  0x13   :  { %38 = dma.hbm_to_vmem [thread:$0]  %s3460_s1, 128, %s36_s25, [#allocation6]  }
  0x14   :  { %s3209_s13 = smov [#allocation8]   ;;  %s3210_s15 = smov [#allocation11]  }
  0x15   :  { %s54_s14 = sshll.u32 %s3209_s13, 4  ;;  %s76_s16 = sshll.u32 %s3210_s15, 4  ;;  %s55_s14 = int_to_ptr.vmem [resolvable:$true] %s54_s14  ;;  %s77_s16 = int_to_ptr.vmem [resolvable:$true] %s76_s16 }
  0x16   :  { %s3044_s19 = scalar_lea.hbm %s3462_s3, 16384 }
  0x17   :  { %p3045_p8 = scmp.ne.s32.totalorder %s3462_s3, %s3044_s19  ;;  %p3048_p9 = scmp.lt.u32.totalorder %s3044_s19, %s3462_s3 }
  0x19   :  { %p3050_p10 = pnand %p3048_p9, %p3045_p8 }
  0x1b   :  { %3053 = shalt.err (!%p3050_p10)
}
  0x1c   :  { %s3054_s1 = scalar_lea.vmem %s55_s14, 16384  ;;  %p3059_p12 = scmp.lt.s32.totalorder %s55_s14, %s55_s14 }
  0x1d   :  { %p3055_p11 = scmp.ne.s32.totalorder %s55_s14, %s3054_s1  ;;  %p3060_p13 = scmp.lt.s32.totalorder %s3054_s1, %s3054_s1 }
  0x1f   :  { %p3061_p0 = por %p3060_p13, %p3059_p12 }
  0x21   :  { %p3062_p1 = pnand %p3061_p0, %p3055_p11 }
  0x23   :  { %3065 = shalt.err (!%p3062_p1)
}
  0x24   :  { %s3211_s24 = smov 128   ;;  %s3212_s25 = smov 8  }
  0x25   :  { %60 = dma.hbm_to_vmem [thread:$0]  %s3462_s3, 16384, %s55_s14, [#allocation9], %s3211_s24, %s3211_s24, %s3212_s25  }
  0x26   :  { %s3066_s30 = scalar_lea.hbm %s3464_s5, 16384 }
  0x27   :  { %p3067_p2 = scmp.ne.s32.totalorder %s3464_s5, %s3066_s30  ;;  %p3070_p3 = scmp.lt.u32.totalorder %s3066_s30, %s3464_s5 }
  0x29   :  { %p3072_p4 = pnand %p3070_p3, %p3067_p2 }
  0x2b   :  { %3075 = shalt.err (!%p3072_p4)
}
  0x2c   :  { %s3076_s12 = scalar_lea.vmem %s77_s16, 16384  ;;  %p3081_p6 = scmp.lt.s32.totalorder %s77_s16, %s77_s16 }
  0x2d   :  { %p3077_p5 = scmp.ne.s32.totalorder %s77_s16, %s3076_s12  ;;  %p3082_p7 = scmp.lt.s32.totalorder %s3076_s12, %s3076_s12 }
  0x2f   :  { %p3083_p8 = por %p3082_p7, %p3081_p6 }
  0x31   :  { %p3084_p9 = pnand %p3083_p8, %p3077_p5 }
  0x33   :  { %3087 = shalt.err (!%p3084_p9)
}
  0x34   :  { %82 = dma.hbm_to_vmem [thread:$0]  %s3464_s5, 16384, %s77_s16, [#allocation12], %s3211_s24, %s3211_s24, %s3212_s25  }
  0x35   :  { %s3213_s14 = smov [#allocation2]   ;;  %s3214_s17 = smov [#allocation7]  }
  0x36   :  { %s22_s15 = sshll.u32 %s3213_s14, 4  ;;  %s45_s18 = sshll.u32 %s3214_s17, 4  ;;  %s23_s15 = int_to_ptr.vmem [resolvable:$true] %s22_s15  ;;  %s46_s18 = int_to_ptr.vmem [resolvable:$true] %s45_s18 }
  0x37   :  { %s3088_s21 = scalar_lea.hbm %s3459_s0, 256 }
  0x38   :  { %p3089_p10 = scmp.ne.s32.totalorder %s3459_s0, %s3088_s21  ;;  %p3092_p11 = scmp.lt.u32.totalorder %s3088_s21, %s3459_s0 }
  0x3a   :  { %p3094_p12 = pnand %p3092_p11, %p3089_p10 }
  0x3c   :  { %3097 = shalt.err (!%p3094_p12)
}
  0x3d   :  { %s3098_s5 = scalar_lea.vmem %s23_s15, 256  ;;  %p3103_p0 = scmp.lt.s32.totalorder %s23_s15, %s23_s15 }
  0x3e   :  { %p3099_p13 = scmp.ne.s32.totalorder %s23_s15, %s3098_s5  ;;  %p3104_p1 = scmp.lt.s32.totalorder %s3098_s5, %s3098_s5 }
  0x40   :  { %p3105_p2 = por %p3104_p1, %p3103_p0 }
  0x42   :  { %p3106_p3 = pnand %p3105_p2, %p3099_p13 }
  0x44   :  { %3109 = shalt.err (!%p3106_p3)
}
  0x45   :  { %28 = dma.hbm_to_vmem [thread:$0]  %s3459_s0, 256, %s23_s15, [#allocation3], %s3211_s24, %s3211_s24, %s3212_s25  }
  0x46   :  { %s3110_s30 = scalar_lea.hbm %s3461_s2, 32 }
  0x47   :  { %p3111_p4 = scmp.ne.s32.totalorder %s3461_s2, %s3110_s30  ;;  %p3114_p5 = scmp.lt.u32.totalorder %s3110_s30, %s3461_s2 }
  0x49   :  { %p3116_p6 = pnand %p3114_p5, %p3111_p4 }
  0x4b   :  { %3119 = shalt.err (!%p3116_p6)
}
  0x4c   :  { %s3120_s12 = scalar_lea.vmem %s46_s18, 32  ;;  %p3125_p8 = scmp.lt.s32.totalorder %s46_s18, %s46_s18 }
  0x4d   :  { %p3121_p7 = scmp.ne.s32.totalorder %s46_s18, %s3120_s12  ;;  %p3126_p9 = scmp.lt.s32.totalorder %s3120_s12, %s3120_s12 }
  0x4f   :  { %p3127_p10 = por %p3126_p9, %p3125_p8 }
  0x51   :  { %p3128_p11 = pnand %p3127_p10, %p3121_p7 }
  0x53   :  { %3131 = shalt.err (!%p3128_p11)
}
  0x54   :  { %48 = dma.hbm_to_vmem [thread:$0]  %s3461_s2, 32, %s46_s18, [#allocation6]  }
  0x55   :  { %s3215_s25 = smov [#allocation10]   ;;  %s3216_s13 = smov [#allocation13]  }
  0x56   :  { %s67_s3 = sshll.u32 %s3215_s25, 4  ;;  %s89_s14 = sshll.u32 %s3216_s13, 4  ;;  %s68_s3 = int_to_ptr.vmem [resolvable:$true] %s67_s3  ;;  %s90_s14 = int_to_ptr.vmem [resolvable:$true] %s89_s14 }
  0x57   :  { %s3132_s19 = scalar_lea.hbm %s3463_s4, 128 }
  0x58   :  { %p3133_p12 = scmp.ne.s32.totalorder %s3463_s4, %s3132_s19  ;;  %p3136_p13 = scmp.lt.u32.totalorder %s3132_s19, %s3463_s4 }
  0x5a   :  { %p3138_p0 = pnand %p3136_p13, %p3133_p12 }
  0x5c   :  { %3141 = shalt.err (!%p3138_p0)
}
  0x5d   :  { %s3142_s2 = scalar_lea.vmem %s68_s3, 128  ;;  %p3147_p2 = scmp.lt.s32.totalorder %s68_s3, %s68_s3 }
  0x5e   :  { %p3143_p1 = scmp.ne.s32.totalorder %s68_s3, %s3142_s2  ;;  %p3148_p3 = scmp.lt.s32.totalorder %s3142_s2, %s3142_s2 }
  0x60   :  { %p3149_p4 = por %p3148_p3, %p3147_p2 }
  0x62   :  { %p3150_p5 = pnand %p3149_p4, %p3143_p1 }
  0x64   :  { %3153 = shalt.err (!%p3150_p5)
}
  0x65   :  { %70 = dma.hbm_to_vmem [thread:$0]  %s3463_s4, 128, %s68_s3, [#allocation9]  }
  0x66   :  { %s3154_s16 = scalar_lea.hbm %s3465_s6, 128 }
  0x67   :  { %p3155_p6 = scmp.ne.s32.totalorder %s3465_s6, %s3154_s16  ;;  %p3158_p7 = scmp.lt.u32.totalorder %s3154_s16, %s3465_s6 }
  0x69   :  { %p3160_p8 = pnand %p3158_p7, %p3155_p6 }
  0x6b   :  { %3163 = shalt.err (!%p3160_p8)
}
  0x6c   :  { %s3164_s8 = scalar_lea.vmem %s90_s14, 128  ;;  %p3169_p10 = scmp.lt.s32.totalorder %s90_s14, %s90_s14 }
  0x6d   :  { %p3165_p9 = scmp.ne.s32.totalorder %s90_s14, %s3164_s8  ;;  %p3170_p11 = scmp.lt.s32.totalorder %s3164_s8, %s3164_s8 }
  0x6f   :  { %p3171_p12 = por %p3170_p11, %p3169_p10 }
  0x71   :  { %p3172_p13 = pnand %p3171_p12, %p3165_p9 }
  0x73   :  { %3175 = shalt.err (!%p3172_p13)
}
  0x74   :  { %92 = dma.hbm_to_vmem [thread:$0]  %s3465_s6, 128, %s90_s14, [#allocation12]  }
  0x75   :  { %3198 = dma.done.wait [#allocation3], 256  }
  0x76   :  { %3199 = vsyncadd [#allocation3], 4294967040 }
  0x77   :  { %3200 = dma.done.wait [#allocation6], 160  }
  0x78   :  { %3201 = vsyncadd [#allocation6], 4294967136 }
  0x79   :  { %3202 = dma.done.wait [#allocation9], 16512  }
  0x7a   :  { %3203 = vsyncadd [#allocation9], 4294950784 }
  0x7b   :  { %3204 = dma.done.wait [#allocation12], 16512  }
  0x7c   :  { %3205 = vsyncadd [#allocation12], 4294950784  ;;  %v3217_v0 = vmov 1   ;;  %v3218_v1 = vmov 0   ;;  %v114_v2 = vld [vmem:[#allocation2] sm:$0xff]  ;;  %v115_v3 = vld [vmem:[#allocation2 + $0x8] sm:$0xff] }
  0x7d   :  { %2633 = vset.pattern.permute.xlu1 %v3217_v0  ;;  %2632 = vset.pattern.permute.xlu0 %v3218_v1  ;;  %v2638_v4 = vld [vmem:[#allocation8 + $0x4] ss:$8 sps:$4 sm:$0xff]   ;;  %v2640_v5 = vld [vmem:[#allocation8] ss:$8 sps:$4 sm:$0xff]   ;;  %v2641_v6 = vld [vmem:[#allocation8 + $0x14] ss:$8 sps:$4 sm:$0xff]   ;;  %v128_v1 = vlaneseq }
  0x7e   :  { %145 = vperm.xlu1 %2633, %v114_v2   ;;  %119 = vperm.xlu0 %2632, %v114_v2   ;;  %v2643_v7 = vld [vmem:[#allocation8 + $0x10] ss:$8 sps:$4 sm:$0xff]   ;;  %v2644_v8 = vld [vmem:[#allocation8 + $0x24] ss:$8 sps:$4 sm:$0xff]   ;;  %v2646_v9 = vld [vmem:[#allocation8 + $0x20] ss:$8 sps:$4 sm:$0xff]  }
  0x7f   :  { %466 = vmatprep.subr.bf16.mxu0 %v2638_v4  ;;  %v3219_v10 = vmov 2   ;;  %v2647_v11 = vld [vmem:[#allocation8 + $0x34] ss:$8 sps:$4 sm:$0xff]   ;;  %v2649_v12 = vld [vmem:[#allocation8 + $0x30] ss:$8 sps:$4 sm:$0xff]   ;;  %v3220_v14 = vmov 3  }
  0x80   :  { %467 = vmatpush1.bf16.msra.mxu0 %v2640_v5  ;;  %v2650_v13 = vld [vmem:[#allocation8 + $0x44] ss:$8 sps:$4 sm:$0xff]   ;;  %v2652_v15 = vld [vmem:[#allocation8 + $0x40] ss:$8 sps:$4 sm:$0xff]   ;;  %v2653_v16 = vld [vmem:[#allocation8 + $0x54] ss:$8 sps:$4 sm:$0xff]  }
  0x81   :  { %468 = vmatprep.subr.bf16.mxu0 %v2641_v6  ;;  %v2655_v17 = vld [vmem:[#allocation8 + $0x50] ss:$8 sps:$4 sm:$0xff]   ;;  %v2656_v18 = vld [vmem:[#allocation8 + $0x64] ss:$8 sps:$4 sm:$0xff]   ;;  %v2658_v19 = vld [vmem:[#allocation8 + $0x60] ss:$8 sps:$4 sm:$0xff]  }
  0x82   :  { %149 = vperm.xlu1 %2633, %v115_v3   ;;  %124 = vperm.xlu0 %2632, %v115_v3   ;;  %v2659_v20 = vld [vmem:[#allocation8 + $0x74] ss:$8 sps:$4 sm:$0xff]   ;;  %v2688_v22 = vld [vmem:[#allocation11] ss:$8 sps:$4 sm:$0xff]   ;;  %v2662_v25 = vld [vmem:[#allocation8 + $0x84] ss:$8 sps:$4 sm:$0xff]  }
  0x83   :  { %v2686_v21 = vld [vmem:[#allocation11 + $0x4] ss:$8 sps:$4 sm:$0xff]   ;;  %v2689_v23 = vld [vmem:[#allocation11 + $0x14] ss:$8 sps:$4 sm:$0xff]   ;;  %v2661_v24 = vld [vmem:[#allocation8 + $0x70] ss:$8 sps:$4 sm:$0xff]  }
  0x84   :  { %469 = vmatpush1.bf16.msra.mxu0 %v2643_v7  ;;  %719 = vmatprep.subr.bf16.mxu1 %v2686_v21  ;;  %v2691_v26 = vld [vmem:[#allocation11 + $0x10] ss:$8 sps:$4 sm:$0xff]   ;;  %v2692_v27 = vld [vmem:[#allocation11 + $0x24] ss:$8 sps:$4 sm:$0xff]   ;;  %v2694_v30 = vld [vmem:[#allocation11 + $0x20] ss:$8 sps:$4 sm:$0xff]  }
  0x85   :  { %470 = vmatprep.subr.bf16.mxu0 %v2644_v8  ;;  %720 = vmatpush1.bf16.msra.mxu1 %v2688_v22  ;;  %v2664_v28 = vld [vmem:[#allocation8 + $0x80] ss:$8 sps:$4 sm:$0xff]   ;;  %v2665_v29 = vld [vmem:[#allocation8 + $0x94] ss:$8 sps:$4 sm:$0xff]   ;;  %v2667_v32 = vld [vmem:[#allocation8 + $0x90] ss:$8 sps:$4 sm:$0xff]  }
  0x86   :  { %2635 = vset.pattern.permute.xlu1 %v3219_v10  ;;  %2634 = vset.pattern.permute.xlu0 %v3219_v10  ;;  %v2695_v31 = vld [vmem:[#allocation11 + $0x34] ss:$8 sps:$4 sm:$0xff]   ;;  %v2697_v34 = vld [vmem:[#allocation11 + $0x30] ss:$8 sps:$4 sm:$0xff]   ;;  %v2698_v35 = vld [vmem:[#allocation11 + $0x44] ss:$8 sps:$4 sm:$0xff]  }
  0x87   :  { %178 = vperm.xlu1 %2635, %v115_v3   ;;  %174 = vperm.xlu0 %2634, %v114_v2   ;;  %v2668_v33 = vld [vmem:[#allocation8 + $0xa4] ss:$8 sps:$4 sm:$0xff]   ;;  %v2670_v36 = vld [vmem:[#allocation8 + $0xa0] ss:$8 sps:$4 sm:$0xff]   ;;  %v2671_v37 = vld [vmem:[#allocation8 + $0xb4] ss:$8 sps:$4 sm:$0xff]  }
  0x88   :  { %471 = vmatpush1.bf16.msra.mxu0 %v2646_v9  ;;  %721 = vmatprep.subr.bf16.mxu1 %v2689_v23  ;;  %v2700_v38 = vld [vmem:[#allocation11 + $0x40] ss:$8 sps:$4 sm:$0xff]   ;;  %v2701_v40 = vld [vmem:[#allocation11 + $0x54] ss:$8 sps:$4 sm:$0xff]   ;;  %v2703_v42 = vld [vmem:[#allocation11 + $0x50] ss:$8 sps:$4 sm:$0xff]  }
  0x89   :  { %472 = vmatprep.subr.bf16.mxu0 %v2647_v11  ;;  %722 = vmatpush1.bf16.msra.mxu1 %v2691_v26  ;;  %v2673_v39 = vld [vmem:[#allocation8 + $0xb0] ss:$8 sps:$4 sm:$0xff]   ;;  %v2674_v41 = vld [vmem:[#allocation8 + $0xc4] ss:$8 sps:$4 sm:$0xff]   ;;  %v2676_v44 = vld [vmem:[#allocation8 + $0xc0] ss:$8 sps:$4 sm:$0xff]  }
  0x8a   :  { %723 = vmatprep.subr.bf16.mxu1 %v2692_v27  ;;  %v2704_v43 = vld [vmem:[#allocation11 + $0x64] ss:$8 sps:$4 sm:$0xff]   ;;  %v2706_v46 = vld [vmem:[#allocation11 + $0x60] ss:$8 sps:$4 sm:$0xff]   ;;  %v2707_v47 = vld [vmem:[#allocation11 + $0x74] ss:$8 sps:$4 sm:$0xff]  }
  0x8b   :  { %2636 = vset.pattern.permute.xlu1 %v3220_v14  ;;  %2637 = vset.pattern.permute.xlu0 %v3220_v14  ;;  %v2677_v45 = vld [vmem:[#allocation8 + $0xd4] ss:$8 sps:$4 sm:$0xff]   ;;  %v2679_v48 = vld [vmem:[#allocation8 + $0xd0] ss:$8 sps:$4 sm:$0xff]   ;;  %v2680_v49 = vld [vmem:[#allocation8 + $0xe4] ss:$8 sps:$4 sm:$0xff]  }
  0x8c   :  { %203 = vperm.xlu1 %2636, %v114_v2   ;;  %207 = vperm.xlu0 %2637, %v115_v3   ;;  %v2709_v50 = vld [vmem:[#allocation11 + $0x70] ss:$8 sps:$4 sm:$0xff]   ;;  %v2710_v51 = vld [vmem:[#allocation11 + $0x84] ss:$8 sps:$4 sm:$0xff]   ;;  %v2712_v54 = vld [vmem:[#allocation11 + $0x80] ss:$8 sps:$4 sm:$0xff]  }
  0x8d   :  { %473 = vmatpush1.bf16.msra.mxu0 %v2649_v12  ;;  %724 = vmatpush1.bf16.msra.mxu1 %v2694_v30  ;;  %v2682_v52 = vld [vmem:[#allocation8 + $0xe0] ss:$8 sps:$4 sm:$0xff]   ;;  %v2683_v53 = vld [vmem:[#allocation8 + $0xf4] ss:$8 sps:$4 sm:$0xff]   ;;  %v2685_v56 = vld [vmem:[#allocation8 + $0xf0] ss:$8 sps:$4 sm:$0xff]  }
  0x8e   :  { %474 = vmatprep.subr.bf16.mxu0 %v2650_v13  ;;  %725 = vmatprep.subr.bf16.mxu1 %v2695_v31  ;;  %v2713_v55 = vld [vmem:[#allocation11 + $0x94] ss:$8 sps:$4 sm:$0xff]   ;;  %v2715_v57 = vld [vmem:[#allocation11 + $0x90] ss:$8 sps:$4 sm:$0xff]   ;;  %v2716_v58 = vld [vmem:[#allocation11 + $0xa4] ss:$8 sps:$4 sm:$0xff]  }
  0x8f   :  { %v2718_v59 = vld [vmem:[#allocation11 + $0xa0] ss:$8 sps:$4 sm:$0xff]   ;;  %v2719_v60 = vld [vmem:[#allocation11 + $0xb4] ss:$8 sps:$4 sm:$0xff]   ;;  %v2721_v61 = vld [vmem:[#allocation11 + $0xb0] ss:$8 sps:$4 sm:$0xff]  }
  0x90   :  { %v2722_v62 = vld [vmem:[#allocation11 + $0xc4] ss:$8 sps:$4 sm:$0xff]   ;;  %v2724_v63 = vld [vmem:[#allocation11 + $0xc0] ss:$8 sps:$4 sm:$0xff]   ;;  %v2725_v0 = vld [vmem:[#allocation11 + $0xd4] ss:$8 sps:$4 sm:$0xff]  }
  0x91   :  { %475 = vmatpush1.bf16.msra.mxu0 %v2652_v15  ;;  %726 = vmatpush1.bf16.msra.mxu1 %v2697_v34  ;;  %v129_v2 = vshrl.u32 %v128_v1, 7  ;;  %v143_v5 = vld [vmem:[#allocation5 + $0x1] ss:$4 sm:$0x3]  ;;  %s3221_s6 = smov [#allocation14]  }
  0x92   :  { %476 = vmatprep.subr.bf16.mxu0 %v2653_v16  ;;  %727 = vmatprep.subr.bf16.mxu1 %v2698_v35  ;;  %v116_v7 = vld [vmem:[#allocation5] ss:$4 sm:$0x3]  ;;  %v172_v13 = vld [vmem:[#allocation5 + $0x2] ss:$4 sm:$0x3] }
  0x93   :  { %v3357_v3 = vsub.s32 0, %v129_v2  ;;  %v3359_v4 = vsub.s32 1, %v129_v2  ;;  %v201_v26 = vld [vmem:[#allocation5 + $0x3] ss:$4 sm:$0x3]  ;;  %s2345_s10 = sshll.u32 %s3221_s6, 4  ;;  %s2346_s10 = int_to_ptr.vmem [resolvable:$true] %s2345_s10 }
  0x94   :  { %v2727_v2 = vld [vmem:[#allocation11 + $0xd0] ss:$8 sps:$4 sm:$0xff]   ;;  %s3176_s11 = scalar_lea.vmem %s2346_s10, 512  ;;  %p3181_p1 = scmp.lt.s32.totalorder %s2346_s10, %s2346_s10 }
  0x95   :  { %477 = vmatpush1.bf16.msra.mxu0 %v2655_v17  ;;  %728 = vmatpush1.bf16.msra.mxu1 %v2700_v38  ;;  %v156_v9 = vrot.slane %v143_v5, %v3357_v3  ;;  %v160_v10 = vrot.slane %v143_v5, %v3359_v4  ;;  %v131_v11 = vrot.slane %v116_v7, %v3357_v3  ;;  %v2728_v5 = vld [vmem:[#allocation11 + $0xe4] ss:$8 sps:$4 sm:$0xff]   ;;  %p3177_p0 = scmp.ne.s32.totalorder %s2346_s10, %s3176_s11  ;;  %p3182_p2 = scmp.lt.s32.totalorder %s3176_s11, %s3176_s11 }
  0x96   :  { %478 = vmatprep.subr.bf16.mxu0 %v2656_v18  ;;  %729 = vmatprep.subr.bf16.mxu1 %v2701_v40  ;;  %v135_v12 = vrot.slane %v116_v7, %v3359_v4  ;;  %v185_v16 = vrot.slane %v172_v13, %v3357_v3  ;;  %v189_v17 = vrot.slane %v172_v13, %v3359_v4  ;;  %v2731_v7 = vld [vmem:[#allocation11 + $0xf4] ss:$8 sps:$4 sm:$0xff]  }
  0x97   :  { %v214_v34 = vrot.slane %v201_v26, %v3357_v3  ;;  %v218_v35 = vrot.slane %v201_v26, %v3359_v4  ;;  %v2742_v13 = vld [vmem:[#allocation8 + $0x124] ss:$8 sps:$4 sm:$0xff]   ;;  %v2758_v26 = vld [vmem:[#allocation8 + $0x180] ss:$8 sps:$4 sm:$0xff]   ;;  %p3183_p3 = por %p3182_p2, %p3181_p1 }
  0x99   :  { %479 = vmatpush1.bf16.msra.mxu0 %v2658_v19  ;;  %730 = vmatpush1.bf16.msra.mxu1 %v2703_v42  ;;  %p3184_p4 = pnand %p3183_p3, %p3177_p0 }
  0x9a   :  { %480 = vmatprep.subr.bf16.mxu0 %v2659_v20  ;;  %731 = vmatprep.subr.bf16.mxu1 %v2704_v43 }
  0x9d   :  { %481 = vmatpush1.bf16.msra.mxu0 %v2661_v24  ;;  %732 = vmatpush1.bf16.msra.mxu1 %v2706_v46 }
  0x9e   :  { %482 = vmatprep.subr.bf16.mxu0 %v2662_v25  ;;  %733 = vmatprep.subr.bf16.mxu1 %v2707_v47 }
  0xa1   :  { %483 = vmatpush1.bf16.msra.mxu0 %v2664_v28  ;;  %734 = vmatpush1.bf16.msra.mxu1 %v2709_v50 }
  0xa2   :  { %484 = vmatprep.subr.bf16.mxu0 %v2665_v29  ;;  %735 = vmatprep.subr.bf16.mxu1 %v2710_v51 }
  0xa5   :  { %485 = vmatpush1.bf16.msra.mxu0 %v2667_v32  ;;  %736 = vmatpush1.bf16.msra.mxu1 %v2712_v54 }
  0xa6   :  { %486 = vmatprep.subr.bf16.mxu0 %v2668_v33  ;;  %737 = vmatprep.subr.bf16.mxu1 %v2713_v55  ;;  %v229_v33 = vld [vmem:[#allocation7] sm:$0x3] }
  0xa7   :  { %v234_v40 = vrot.slane %v229_v33, %v3357_v3 }
  0xa9   :  { %487 = vmatpush1.bf16.msra.mxu0 %v2670_v36  ;;  %738 = vmatpush1.bf16.msra.mxu1 %v2715_v57 }
  0xaa   :  { %488 = vmatprep.subr.bf16.mxu0 %v2671_v37  ;;  %739 = vmatprep.subr.bf16.mxu1 %v2716_v58 }
  0xad   :  { %489 = vmatpush1.bf16.msra.mxu0 %v2673_v39  ;;  %740 = vmatpush1.bf16.msra.mxu1 %v2718_v59 }
  0xae   :  { %490 = vmatprep.subr.bf16.mxu0 %v2674_v41  ;;  %741 = vmatprep.subr.bf16.mxu1 %v2719_v60  ;;  %v238_v41 = vrot.slane %v229_v33, %v3359_v4 }
  0xb1   :  { %491 = vmatpush1.bf16.msra.mxu0 %v2676_v44  ;;  %742 = vmatpush1.bf16.msra.mxu1 %v2721_v61 }
  0xb2   :  { %492 = vmatprep.subr.bf16.mxu0 %v2677_v45  ;;  %743 = vmatprep.subr.bf16.mxu1 %v2722_v62 }
  0xb5   :  { %493 = vmatpush1.bf16.msra.mxu0 %v2679_v48  ;;  %744 = vmatpush1.bf16.msra.mxu1 %v2724_v63 }
  0xb6   :  { %494 = vmatprep.subr.bf16.mxu0 %v2680_v49  ;;  %745 = vmatprep.subr.bf16.mxu1 %v2725_v0 }
  0xb9   :  { %495 = vmatpush1.bf16.msra.mxu0 %v2682_v52  ;;  %746 = vmatpush1.bf16.msra.mxu1 %v2727_v2  ;;  %v2782_v2 = vld [vmem:[#allocation11 + $0x100] ss:$8 sps:$4 sm:$0xff]  }
  0xba   :  { %496 = vmatprep.subr.bf16.mxu0 %v2683_v53  ;;  %747 = vmatprep.subr.bf16.mxu1 %v2728_v5  ;;  %v2784_v5 = vld [vmem:[#allocation11 + $0x104] ss:$8 sps:$4 sm:$0xff]  }
  0xbd   :  { %497 = vmatpush1.bf16.msra.mxu0 %v2685_v56 }
  0xfd   :  { %v146_v6 = vpop.permute.xlu1 %145  ;;  %v120_v8 = vpop.permute.xlu0 %119 }
  0xfe   :  { %v163_v18 = vmul.f32 %v156_v9, %v146_v6  ;;  %v164_v19 = vmul.f32 %v160_v10, %v146_v6  ;;  %v138_v20 = vmul.f32 %v131_v11, %v120_v8  ;;  %v139_v21 = vmul.f32 %v135_v12, %v120_v8  ;;  %v2730_v6 = vld [vmem:[#allocation11 + $0xe0] ss:$8 sps:$4 sm:$0xff]   ;;  %v2733_v8 = vld [vmem:[#allocation11 + $0xf0] ss:$8 sps:$4 sm:$0xff]  }
  0xff   :  { %748 = vmatpush1.bf16.msra.mxu1 %v2730_v6  ;;  %v2787_v6 = vld [vmem:[#allocation11 + $0x114] ss:$8 sps:$4 sm:$0xff]  }
 0x100   :  { %v167_v36 = vadd.f32 %v163_v18, %v138_v20  ;;  %v168_v37 = vadd.f32 %v164_v19, %v139_v21  ;;  %749 = vmatprep.subr.bf16.mxu1 %v2731_v7  ;;  %v2746_v18 = vld [vmem:[#allocation8 + $0x140] ss:$8 sps:$4 sm:$0xff]   ;;  %v2751_v19 = vld [vmem:[#allocation8 + $0x154] ss:$8 sps:$4 sm:$0xff]   ;;  %v2749_v20 = vld [vmem:[#allocation8 + $0x150] ss:$8 sps:$4 sm:$0xff]  }
 0x101   :  { %v150_v14 = vpop.permute.xlu1 %149  ;;  %v125_v15 = vpop.permute.xlu0 %124  ;;  %v2754_v21 = vld [vmem:[#allocation8 + $0x164] ss:$8 sps:$4 sm:$0xff]   ;;  %v2785_v7 = vld [vmem:[#allocation11 + $0x110] ss:$8 sps:$4 sm:$0xff]  }
 0x102   :  { %v165_v22 = vmul.f32 %v156_v9, %v150_v14  ;;  %v166_v23 = vmul.f32 %v160_v10, %v150_v14  ;;  %v140_v24 = vmul.f32 %v131_v11, %v125_v15  ;;  %v141_v25 = vmul.f32 %v135_v12, %v125_v15  ;;  %v2734_v9 = vld [vmem:[#allocation8 + $0x100] ss:$8 sps:$4 sm:$0xff]   ;;  %v2736_v10 = vld [vmem:[#allocation8 + $0x104] ss:$8 sps:$4 sm:$0xff]   ;;  %v2739_v11 = vld [vmem:[#allocation8 + $0x114] ss:$8 sps:$4 sm:$0xff]  }
 0x103   :  { %750 = vmatpush1.bf16.msra.mxu1 %v2733_v8  ;;  %986 = vmatprep.subr.bf16.mxu0 %v2736_v10  ;;  %v2737_v12 = vld [vmem:[#allocation8 + $0x110] ss:$8 sps:$4 sm:$0xff]   ;;  %v2740_v14 = vld [vmem:[#allocation8 + $0x120] ss:$8 sps:$4 sm:$0xff]   ;;  %v2745_v15 = vld [vmem:[#allocation8 + $0x134] ss:$8 sps:$4 sm:$0xff]  }
 0x104   :  { %v169_v38 = vadd.f32 %v165_v22, %v140_v24  ;;  %v170_v39 = vadd.f32 %v166_v23, %v141_v25  ;;  %v2752_v22 = vld [vmem:[#allocation8 + $0x160] ss:$8 sps:$4 sm:$0xff]   ;;  %v2757_v23 = vld [vmem:[#allocation8 + $0x174] ss:$8 sps:$4 sm:$0xff]   ;;  %v2755_v24 = vld [vmem:[#allocation8 + $0x170] ss:$8 sps:$4 sm:$0xff]   ;;  %1241 = vmatprep.subr.bf16.mxu1 %v2784_v5 }
 0x105   :  { %v2760_v25 = vld [vmem:[#allocation8 + $0x184] ss:$8 sps:$4 sm:$0xff]   ;;  %v2847_v5 = vld [vmem:[#allocation8 + $0x254] ss:$8 sps:$4 sm:$0xff]  }
 0x106   :  { %v179_v27 = vpop.permute.xlu1 %178  ;;  %v175_v28 = vpop.permute.xlu0 %174  ;;  %v2790_v8 = vld [vmem:[#allocation11 + $0x124] ss:$8 sps:$4 sm:$0xff]   ;;  %v2793_v10 = vld [vmem:[#allocation11 + $0x134] ss:$8 sps:$4 sm:$0xff]  }
 0x107   :  { %v194_v29 = vmul.f32 %v185_v16, %v179_v27  ;;  %v195_v30 = vmul.f32 %v189_v17, %v179_v27  ;;  %v192_v31 = vmul.f32 %v185_v16, %v175_v28  ;;  %v193_v32 = vmul.f32 %v189_v17, %v175_v28  ;;  %v2743_v16 = vld [vmem:[#allocation8 + $0x130] ss:$8 sps:$4 sm:$0xff]   ;;  %v2748_v17 = vld [vmem:[#allocation8 + $0x144] ss:$8 sps:$4 sm:$0xff]   ;;  %v2763_v27 = vld [vmem:[#allocation8 + $0x194] ss:$8 sps:$4 sm:$0xff]  }
 0x108   :  { %v2761_v28 = vld [vmem:[#allocation8 + $0x190] ss:$8 sps:$4 sm:$0xff]  }
 0x109   :  { %v198_v42 = vadd.f32 %v194_v29, %v169_v38  ;;  %v199_v43 = vadd.f32 %v195_v30, %v170_v39  ;;  %v196_v44 = vadd.f32 %v192_v31, %v167_v36  ;;  %v197_v45 = vadd.f32 %v193_v32, %v168_v37  ;;  %v2766_v29 = vld [vmem:[#allocation8 + $0x1a4] ss:$8 sps:$4 sm:$0xff]   ;;  %v2764_v30 = vld [vmem:[#allocation8 + $0x1a0] ss:$8 sps:$4 sm:$0xff]  }
 0x10a   :  { %v294_v31 = vld [vmem:[#allocation10] ss:$4 sm:$0x3] }
 0x10b   :  { %v204_v46 = vpop.permute.xlu1 %203  ;;  %v208_v47 = vpop.permute.xlu0 %207  ;;  %v299_v32 = vrot.slane %v294_v31, %v3357_v3  ;;  %v303_v33 = vrot.slane %v294_v31, %v3359_v4  ;;  %v2821_v31 = vld [vmem:[#allocation11 + $0x1d0] ss:$8 sps:$4 sm:$0xff]  }
 0x10c   :  { %v221_v48 = vmul.f32 %v214_v34, %v204_v46  ;;  %v222_v49 = vmul.f32 %v218_v35, %v204_v46  ;;  %v223_v50 = vmul.f32 %v214_v34, %v208_v47  ;;  %v224_v51 = vmul.f32 %v218_v35, %v208_v47 }
 0x10e   :  { %v225_v52 = vadd.f32 %v221_v48, %v196_v44  ;;  %v226_v53 = vadd.f32 %v222_v49, %v197_v45  ;;  %v227_v54 = vadd.f32 %v223_v50, %v198_v42  ;;  %v228_v55 = vadd.f32 %v224_v51, %v199_v43  ;;  %v2769_v48 = vld [vmem:[#allocation8 + $0x1b4] ss:$8 sps:$4 sm:$0xff]   ;;  %v2767_v49 = vld [vmem:[#allocation8 + $0x1b0] ss:$8 sps:$4 sm:$0xff]   ;;  %v2772_v50 = vld [vmem:[#allocation8 + $0x1c4] ss:$8 sps:$4 sm:$0xff]  }
 0x10f   :  { %v2770_v51 = vld [vmem:[#allocation8 + $0x1c0] ss:$8 sps:$4 sm:$0xff]  }
 0x110   :  { %v3371_v56 = vadd.f32 %v234_v40, %v225_v52  ;;  %v3373_v57 = vadd.f32 %v238_v41, %v226_v53  ;;  %v3375_v58 = vadd.f32 %v234_v40, %v227_v54  ;;  %v3377_v59 = vadd.f32 %v238_v41, %v228_v55  ;;  %v2775_v52 = vld [vmem:[#allocation8 + $0x1d4] ss:$8 sps:$4 sm:$0xff]   ;;  %v2773_v53 = vld [vmem:[#allocation8 + $0x1d0] ss:$8 sps:$4 sm:$0xff]   ;;  %v2778_v54 = vld [vmem:[#allocation8 + $0x1e4] ss:$8 sps:$4 sm:$0xff]  }
 0x111   :  { %v2776_v55 = vld [vmem:[#allocation8 + $0x1e0] ss:$8 sps:$4 sm:$0xff]  }
 0x112   :  { %v245_v60 = vmax.f32 %v3371_v56, 0.0  ;;  %v246_v61 = vmax.f32 %v3373_v57, 0.0  ;;  %v247_v62 = vmax.f32 %v3375_v58, 0.0  ;;  %v248_v63 = vmax.f32 %v3377_v59, 0.0  ;;  %v2824_v57 = vld [vmem:[#allocation11 + $0x1e0] ss:$8 sps:$4 sm:$0xff]  }
 0x113   :  { %v2827_v59 = vld [vmem:[#allocation11 + $0x1f0] ss:$8 sps:$4 sm:$0xff]   ;;  %v2832_v56 = vld [vmem:[#allocation8 + $0x204] ss:$8 sps:$4 sm:$0xff]  }
 0x114   :  { %v261_v0 = vpack.c.bf16 %v248_v63, %v246_v61  ;;  %v260_v1 = vpack.c.bf16 %v247_v62, %v245_v60 }
 0x116   :  { %498 = vmatprep.mubr.bf16.mxu0 %v261_v0  ;;  %v2781_v0 = vld [vmem:[#allocation8 + $0x1f4] ss:$8 sps:$4 sm:$0xff]  }
 0x117   :  { %499 = vmatmul.mubr.bf16.vlgmr.msra.gmra.mrb[0].mxu0 %v260_v1  ;;  %v2779_v1 = vld [vmem:[#allocation8 + $0x1f0] ss:$8 sps:$4 sm:$0xff]  }
 0x118   :  { %987 = vmatpush1.bf16.msra.mxu0 %v2734_v9  ;;  %v2788_v9 = vld [vmem:[#allocation11 + $0x120] ss:$8 sps:$4 sm:$0xff]  }
 0x119   :  { %988 = vmatprep.subr.bf16.mxu0 %v2739_v11  ;;  %v2791_v11 = vld [vmem:[#allocation11 + $0x130] ss:$8 sps:$4 sm:$0xff]  }
 0x11c   :  { %989 = vmatpush1.bf16.msra.mxu0 %v2737_v12  ;;  %v2796_v12 = vld [vmem:[#allocation11 + $0x144] ss:$8 sps:$4 sm:$0xff]  }
 0x11d   :  { %990 = vmatprep.subr.bf16.mxu0 %v2742_v13  ;;  %v2794_v13 = vld [vmem:[#allocation11 + $0x140] ss:$8 sps:$4 sm:$0xff]  }
 0x120   :  { %991 = vmatpush1.bf16.msra.mxu0 %v2740_v14  ;;  %v2799_v14 = vld [vmem:[#allocation11 + $0x154] ss:$8 sps:$4 sm:$0xff]  }
 0x121   :  { %992 = vmatprep.subr.bf16.mxu0 %v2745_v15  ;;  %v2797_v15 = vld [vmem:[#allocation11 + $0x150] ss:$8 sps:$4 sm:$0xff]  }
 0x124   :  { %993 = vmatpush1.bf16.msra.mxu0 %v2743_v16  ;;  %v2802_v16 = vld [vmem:[#allocation11 + $0x164] ss:$8 sps:$4 sm:$0xff]  }
 0x125   :  { %994 = vmatprep.subr.bf16.mxu0 %v2748_v17  ;;  %v2800_v17 = vld [vmem:[#allocation11 + $0x160] ss:$8 sps:$4 sm:$0xff]  }
 0x128   :  { %995 = vmatpush1.bf16.msra.mxu0 %v2746_v18  ;;  %v2805_v18 = vld [vmem:[#allocation11 + $0x174] ss:$8 sps:$4 sm:$0xff]  }
 0x129   :  { %996 = vmatprep.subr.bf16.mxu0 %v2751_v19  ;;  %v2803_v19 = vld [vmem:[#allocation11 + $0x170] ss:$8 sps:$4 sm:$0xff]  }
 0x12c   :  { %997 = vmatpush1.bf16.msra.mxu0 %v2749_v20  ;;  %v2808_v20 = vld [vmem:[#allocation11 + $0x184] ss:$8 sps:$4 sm:$0xff]  }
 0x12d   :  { %998 = vmatprep.subr.bf16.mxu0 %v2754_v21  ;;  %v2806_v21 = vld [vmem:[#allocation11 + $0x180] ss:$8 sps:$4 sm:$0xff]  }
 0x130   :  { %999 = vmatpush1.bf16.msra.mxu0 %v2752_v22  ;;  %v2811_v22 = vld [vmem:[#allocation11 + $0x194] ss:$8 sps:$4 sm:$0xff]  }
 0x131   :  { %1000 = vmatprep.subr.bf16.mxu0 %v2757_v23  ;;  %v2809_v23 = vld [vmem:[#allocation11 + $0x190] ss:$8 sps:$4 sm:$0xff]  }
 0x134   :  { %1001 = vmatpush1.bf16.msra.mxu0 %v2755_v24  ;;  %v2814_v24 = vld [vmem:[#allocation11 + $0x1a4] ss:$8 sps:$4 sm:$0xff]  }
 0x135   :  { %1002 = vmatprep.subr.bf16.mxu0 %v2760_v25  ;;  %v2812_v25 = vld [vmem:[#allocation11 + $0x1a0] ss:$8 sps:$4 sm:$0xff]  }
 0x138   :  { %1003 = vmatpush1.bf16.msra.mxu0 %v2758_v26  ;;  %v2817_v26 = vld [vmem:[#allocation11 + $0x1b4] ss:$8 sps:$4 sm:$0xff]  }
 0x139   :  { %1004 = vmatprep.subr.bf16.mxu0 %v2763_v27  ;;  %v2815_v27 = vld [vmem:[#allocation11 + $0x1b0] ss:$8 sps:$4 sm:$0xff]  }
 0x13c   :  { %1005 = vmatpush1.bf16.msra.mxu0 %v2761_v28  ;;  %v2820_v28 = vld [vmem:[#allocation11 + $0x1c4] ss:$8 sps:$4 sm:$0xff]  }
 0x13d   :  { %1006 = vmatprep.subr.bf16.mxu0 %v2766_v29  ;;  %v2818_v29 = vld [vmem:[#allocation11 + $0x1c0] ss:$8 sps:$4 sm:$0xff]  }
 0x140   :  { %1007 = vmatpush1.bf16.msra.mxu0 %v2764_v30  ;;  %v2823_v30 = vld [vmem:[#allocation11 + $0x1d4] ss:$8 sps:$4 sm:$0xff]  }
 0x141   :  { %1008 = vmatprep.subr.bf16.mxu0 %v2769_v48 }
 0x144   :  { %1009 = vmatpush1.bf16.msra.mxu0 %v2767_v49 }
 0x145   :  { %1010 = vmatprep.subr.bf16.mxu0 %v2772_v50 }
 0x148   :  { %1011 = vmatpush1.bf16.msra.mxu0 %v2770_v51 }
 0x149   :  { %1012 = vmatprep.subr.bf16.mxu0 %v2775_v52  ;;  %v2833_v52 = vld [vmem:[#allocation8 + $0x210] ss:$8 sps:$4 sm:$0xff]  }
 0x14c   :  { %1013 = vmatpush1.bf16.msra.mxu0 %v2773_v53  ;;  %v2838_v53 = vld [vmem:[#allocation8 + $0x224] ss:$8 sps:$4 sm:$0xff]  }
 0x14d   :  { %1014 = vmatprep.subr.bf16.mxu0 %v2778_v54  ;;  %v2836_v54 = vld [vmem:[#allocation8 + $0x220] ss:$8 sps:$4 sm:$0xff]  }
 0x150   :  { %1015 = vmatpush1.bf16.msra.mxu0 %v2776_v55  ;;  %v2841_v55 = vld [vmem:[#allocation8 + $0x234] ss:$8 sps:$4 sm:$0xff]  }
 0x151   :  { %1016 = vmatprep.subr.bf16.mxu0 %v2781_v0  ;;  %v2839_v0 = vld [vmem:[#allocation8 + $0x230] ss:$8 sps:$4 sm:$0xff]  }
 0x154   :  { %1017 = vmatpush1.bf16.msra.mxu0 %v2779_v1  ;;  %v2844_v1 = vld [vmem:[#allocation8 + $0x244] ss:$8 sps:$4 sm:$0xff]  }
 0x155   :  { %1508 = vmatprep.subr.bf16.mxu0 %v2832_v56  ;;  %v2895_v56 = vld [vmem:[#allocation11 + $0x254] ss:$8 sps:$4 sm:$0xff]  }
 0x1ea   :  { %v500_v34 = vpop.f32.mrb[0].mxu0 }
 0x1eb   :  { %v501_v35 = vadd.f32 %v500_v34, %v299_v32  ;;  %v502_v36 = vpop.f32.mrb[1].mxu0 }
 0x1ec   :  { %v503_v37 = vadd.f32 %v502_v36, %v303_v33  ;;  %v504_v38 = vpop.f32.mrb[2].mxu0 }
 0x1ed   :  { %v505_v39 = vadd.f32 %v504_v38, %v299_v32  ;;  %v506_v40 = vpop.f32.mrb[3].mxu0  ;;  %v509_v42 = vmax.f32 %v501_v35, 0.0  ;;  %v547_v32 = vld [vmem:[#allocation13] ss:$4 sm:$0x3] }
 0x1ee   :  { %v507_v41 = vadd.f32 %v506_v40, %v303_v33  ;;  %v510_v44 = vmax.f32 %v503_v37, 0.0  ;;  %v552_v33 = vrot.slane %v547_v32, %v3357_v3  ;;  %v556_v34 = vrot.slane %v547_v32, %v3359_v4 }
 0x1ef   :  { %v511_v43 = vmax.f32 %v505_v39, 0.0 }
 0x1f0   :  { %v512_v45 = vmax.f32 %v507_v41, 0.0 }
 0x1f1   :  { %v513_v46 = vpack.c.bf16 %v511_v43, %v509_v42 }
 0x1f2   :  { %v514_v47 = vpack.c.bf16 %v512_v45, %v510_v44 }
 0x1f4   :  { %751 = vmatprep.mubr.bf16.mxu1 %v514_v47 }
 0x1f5   :  { %752 = vmatmul.mubr.bf16.vlgmr.msra.gmra.mrb[0].mxu1 %v513_v46 }
 0x1f6   :  { %1242 = vmatpush1.bf16.msra.mxu1 %v2782_v2  ;;  %v2842_v2 = vld [vmem:[#allocation8 + $0x240] ss:$8 sps:$4 sm:$0xff]  }
 0x1f7   :  { %1243 = vmatprep.subr.bf16.mxu1 %v2787_v6  ;;  %v2845_v6 = vld [vmem:[#allocation8 + $0x250] ss:$8 sps:$4 sm:$0xff]  }
 0x1fa   :  { %1244 = vmatpush1.bf16.msra.mxu1 %v2785_v7  ;;  %v2850_v7 = vld [vmem:[#allocation8 + $0x264] ss:$8 sps:$4 sm:$0xff]  }
 0x1fb   :  { %1245 = vmatprep.subr.bf16.mxu1 %v2790_v8  ;;  %v2848_v8 = vld [vmem:[#allocation8 + $0x260] ss:$8 sps:$4 sm:$0xff]  }
 0x1fe   :  { %1246 = vmatpush1.bf16.msra.mxu1 %v2788_v9  ;;  %v2853_v9 = vld [vmem:[#allocation8 + $0x274] ss:$8 sps:$4 sm:$0xff]  }
 0x1ff   :  { %1247 = vmatprep.subr.bf16.mxu1 %v2793_v10  ;;  %v2851_v10 = vld [vmem:[#allocation8 + $0x270] ss:$8 sps:$4 sm:$0xff]  }
 0x202   :  { %1248 = vmatpush1.bf16.msra.mxu1 %v2791_v11  ;;  %v2856_v11 = vld [vmem:[#allocation8 + $0x284] ss:$8 sps:$4 sm:$0xff]  }
 0x203   :  { %1249 = vmatprep.subr.bf16.mxu1 %v2796_v12  ;;  %v2854_v12 = vld [vmem:[#allocation8 + $0x280] ss:$8 sps:$4 sm:$0xff]  }
 0x206   :  { %1250 = vmatpush1.bf16.msra.mxu1 %v2794_v13  ;;  %v2859_v13 = vld [vmem:[#allocation8 + $0x294] ss:$8 sps:$4 sm:$0xff]  }
 0x207   :  { %1251 = vmatprep.subr.bf16.mxu1 %v2799_v14  ;;  %v2857_v14 = vld [vmem:[#allocation8 + $0x290] ss:$8 sps:$4 sm:$0xff]  }
 0x20a   :  { %1252 = vmatpush1.bf16.msra.mxu1 %v2797_v15  ;;  %v2862_v15 = vld [vmem:[#allocation8 + $0x2a4] ss:$8 sps:$4 sm:$0xff]  }
 0x20b   :  { %1253 = vmatprep.subr.bf16.mxu1 %v2802_v16  ;;  %v2860_v16 = vld [vmem:[#allocation8 + $0x2a0] ss:$8 sps:$4 sm:$0xff]  }
 0x20e   :  { %1254 = vmatpush1.bf16.msra.mxu1 %v2800_v17  ;;  %v814_v17 = vld [vmem:[#allocation10 + $0x1] ss:$4 sm:$0x3] }
 0x20f   :  { %1255 = vmatprep.subr.bf16.mxu1 %v2805_v18  ;;  %v819_v18 = vrot.slane %v814_v17, %v3357_v3 }
 0x212   :  { %1256 = vmatpush1.bf16.msra.mxu1 %v2803_v19  ;;  %v823_v19 = vrot.slane %v814_v17, %v3359_v4 }
 0x213   :  { %1257 = vmatprep.subr.bf16.mxu1 %v2808_v20 }
 0x216   :  { %1258 = vmatpush1.bf16.msra.mxu1 %v2806_v21 }
 0x217   :  { %1259 = vmatprep.subr.bf16.mxu1 %v2811_v22 }
 0x21a   :  { %1260 = vmatpush1.bf16.msra.mxu1 %v2809_v23 }
 0x21b   :  { %1261 = vmatprep.subr.bf16.mxu1 %v2814_v24 }
 0x21e   :  { %1262 = vmatpush1.bf16.msra.mxu1 %v2812_v25 }
 0x21f   :  { %1263 = vmatprep.subr.bf16.mxu1 %v2817_v26 }
 0x222   :  { %1264 = vmatpush1.bf16.msra.mxu1 %v2815_v27 }
 0x223   :  { %1265 = vmatprep.subr.bf16.mxu1 %v2820_v28 }
 0x226   :  { %1266 = vmatpush1.bf16.msra.mxu1 %v2818_v29 }
 0x227   :  { %1267 = vmatprep.subr.bf16.mxu1 %v2823_v30 }
 0x22a   :  { %1268 = vmatpush1.bf16.msra.mxu1 %v2821_v31 }
 0x2c8   :  { %v753_v35 = vpop.f32.mrb[0].mxu1 }
 0x2c9   :  { %v754_v36 = vadd.f32 %v753_v35, %v552_v33  ;;  %v755_v37 = vpop.f32.mrb[1].mxu1  ;;  %v2863_v35 = vld [vmem:[#allocation8 + $0x2b0] ss:$8 sps:$4 sm:$0xff]  }
 0x2ca   :  { %v756_v38 = vadd.f32 %v755_v37, %v556_v34  ;;  %v757_v39 = vpop.f32.mrb[2].mxu1  ;;  %v2866_v37 = vld [vmem:[#allocation8 + $0x2c0] ss:$8 sps:$4 sm:$0xff]  }
 0x2cb   :  { %v758_v40 = vadd.f32 %v757_v39, %v552_v33  ;;  %v759_v41 = vpop.f32.mrb[3].mxu1  ;;  %v762_v44 = vmax.f32 %v754_v36, 0.0  ;;  %v2868_v36 = vld [vmem:[#allocation8 + $0x2c4] ss:$8 sps:$4 sm:$0xff]   ;;  %v2869_v39 = vld [vmem:[#allocation8 + $0x2d0] ss:$8 sps:$4 sm:$0xff]  }
 0x2cc   :  { %v763_v42 = vmax.f32 %v756_v38, 0.0  ;;  %v760_v43 = vadd.f32 %v759_v41, %v556_v34  ;;  %v2865_v34 = vld [vmem:[#allocation8 + $0x2b4] ss:$8 sps:$4 sm:$0xff]   ;;  %v2872_v41 = vld [vmem:[#allocation8 + $0x2e0] ss:$8 sps:$4 sm:$0xff]  }
 0x2cd   :  { %v764_v45 = vmax.f32 %v758_v40, 0.0  ;;  %v3409_v50 = vadd.f32 %v762_v44, %v245_v60  ;;  %v2835_v60 = vld [vmem:[#allocation8 + $0x214] ss:$8 sps:$4 sm:$0xff]   ;;  %v2874_v40 = vld [vmem:[#allocation8 + $0x2e4] ss:$8 sps:$4 sm:$0xff]  }
 0x2ce   :  { %v765_v46 = vmax.f32 %v760_v43, 0.0  ;;  %v3401_v48 = vadd.f32 %v763_v42, %v246_v61  ;;  %v2829_v61 = vld [vmem:[#allocation11 + $0x1f4] ss:$8 sps:$4 sm:$0xff]   ;;  %v2875_v43 = vld [vmem:[#allocation8 + $0x2f0] ss:$8 sps:$4 sm:$0xff]  }
 0x2cf   :  { %v3397_v47 = vadd.f32 %v764_v45, %v247_v62  ;;  %v2826_v62 = vld [vmem:[#allocation11 + $0x1e4] ss:$8 sps:$4 sm:$0xff]   ;;  %v2878_v44 = vld [vmem:[#allocation11 + $0x200] ss:$8 sps:$4 sm:$0xff]  }
 0x2d0   :  { %v3405_v49 = vadd.f32 %v765_v46, %v248_v63  ;;  %1269 = vmatprep.subr.bf16.mxu1 %v2826_v62  ;;  %v2830_v63 = vld [vmem:[#allocation8 + $0x200] ss:$8 sps:$4 sm:$0xff]   ;;  %v2871_v38 = vld [vmem:[#allocation8 + $0x2d4] ss:$8 sps:$4 sm:$0xff]  }
 0x2d1   :  { %v778_v58 = vpack.c.bf16 %v3397_v47, %v3409_v50  ;;  %1270 = vmatpush1.bf16.msra.mxu1 %v2824_v57  ;;  %v2877_v42 = vld [vmem:[#allocation8 + $0x2f4] ss:$8 sps:$4 sm:$0xff]   ;;  %v2884_v62 = vld [vmem:[#allocation11 + $0x220] ss:$8 sps:$4 sm:$0xff]  }
 0x2d2   :  { %v779_v51 = vpack.c.bf16 %v3405_v49, %v3401_v48  ;;  %1271 = vmatprep.subr.bf16.mxu1 %v2829_v61  ;;  %v2880_v45 = vld [vmem:[#allocation11 + $0x204] ss:$8 sps:$4 sm:$0xff]   ;;  %v2883_v46 = vld [vmem:[#allocation11 + $0x214] ss:$8 sps:$4 sm:$0xff]   ;;  %v2887_v61 = vld [vmem:[#allocation11 + $0x230] ss:$8 sps:$4 sm:$0xff]  }
 0x2d3   :  { %v2889_v57 = vld [vmem:[#allocation11 + $0x234] ss:$8 sps:$4 sm:$0xff]  }
 0x2d4   :  { %1018 = vmatprep.mubr.bf16.mxu0 %v779_v51  ;;  %v2881_v51 = vld [vmem:[#allocation11 + $0x210] ss:$8 sps:$4 sm:$0xff]  }
 0x2d5   :  { %1019 = vmatmul.mubr.bf16.vlgmr.msra.gmra.mrb[4].mxu0 %v778_v58  ;;  %1272 = vmatpush1.bf16.msra.mxu1 %v2827_v59  ;;  %v2886_v58 = vld [vmem:[#allocation11 + $0x224] ss:$8 sps:$4 sm:$0xff]  }
 0x2d6   :  { %1509 = vmatpush1.bf16.msra.mxu0 %v2830_v63  ;;  %1763 = vmatprep.subr.bf16.mxu1 %v2880_v45  ;;  %v2892_v59 = vld [vmem:[#allocation11 + $0x244] ss:$8 sps:$4 sm:$0xff]   ;;  %v2890_v63 = vld [vmem:[#allocation11 + $0x240] ss:$8 sps:$4 sm:$0xff]  }
 0x2d7   :  { %1510 = vmatprep.subr.bf16.mxu0 %v2835_v60  ;;  %v2893_v60 = vld [vmem:[#allocation11 + $0x250] ss:$8 sps:$4 sm:$0xff]   ;;  %v2943_v45 = vld [vmem:[#allocation8 + $0x354] ss:$8 sps:$4 sm:$0xff]  }
 0x2da   :  { %1511 = vmatpush1.bf16.msra.mxu0 %v2833_v52  ;;  %v2898_v52 = vld [vmem:[#allocation11 + $0x264] ss:$8 sps:$4 sm:$0xff]  }
 0x2db   :  { %1512 = vmatprep.subr.bf16.mxu0 %v2838_v53  ;;  %v2896_v53 = vld [vmem:[#allocation11 + $0x260] ss:$8 sps:$4 sm:$0xff]  }
 0x2de   :  { %1513 = vmatpush1.bf16.msra.mxu0 %v2836_v54  ;;  %v2901_v54 = vld [vmem:[#allocation11 + $0x274] ss:$8 sps:$4 sm:$0xff]  }
 0x2df   :  { %1514 = vmatprep.subr.bf16.mxu0 %v2841_v55  ;;  %v2899_v55 = vld [vmem:[#allocation11 + $0x270] ss:$8 sps:$4 sm:$0xff]  }
 0x2e2   :  { %1515 = vmatpush1.bf16.msra.mxu0 %v2839_v0  ;;  %v2904_v0 = vld [vmem:[#allocation11 + $0x284] ss:$8 sps:$4 sm:$0xff]  }
 0x2e3   :  { %1516 = vmatprep.subr.bf16.mxu0 %v2844_v1  ;;  %v2902_v1 = vld [vmem:[#allocation11 + $0x280] ss:$8 sps:$4 sm:$0xff]  }
 0x2e6   :  { %1517 = vmatpush1.bf16.msra.mxu0 %v2842_v2  ;;  %v2907_v2 = vld [vmem:[#allocation11 + $0x294] ss:$8 sps:$4 sm:$0xff]  }
 0x2e7   :  { %1518 = vmatprep.subr.bf16.mxu0 %v2847_v5  ;;  %v2905_v5 = vld [vmem:[#allocation11 + $0x290] ss:$8 sps:$4 sm:$0xff]  }
 0x2ea   :  { %1519 = vmatpush1.bf16.msra.mxu0 %v2845_v6  ;;  %v2910_v6 = vld [vmem:[#allocation11 + $0x2a4] ss:$8 sps:$4 sm:$0xff]  }
 0x2eb   :  { %1520 = vmatprep.subr.bf16.mxu0 %v2850_v7  ;;  %v2908_v7 = vld [vmem:[#allocation11 + $0x2a0] ss:$8 sps:$4 sm:$0xff]  }
 0x2ee   :  { %1521 = vmatpush1.bf16.msra.mxu0 %v2848_v8  ;;  %v2913_v8 = vld [vmem:[#allocation11 + $0x2b4] ss:$8 sps:$4 sm:$0xff]  }
 0x2ef   :  { %1522 = vmatprep.subr.bf16.mxu0 %v2853_v9  ;;  %v2911_v9 = vld [vmem:[#allocation11 + $0x2b0] ss:$8 sps:$4 sm:$0xff]  }
 0x2f2   :  { %1523 = vmatpush1.bf16.msra.mxu0 %v2851_v10  ;;  %v2916_v10 = vld [vmem:[#allocation11 + $0x2c4] ss:$8 sps:$4 sm:$0xff]  }
 0x2f3   :  { %1524 = vmatprep.subr.bf16.mxu0 %v2856_v11  ;;  %v2914_v11 = vld [vmem:[#allocation11 + $0x2c0] ss:$8 sps:$4 sm:$0xff]  }
 0x2f6   :  { %1525 = vmatpush1.bf16.msra.mxu0 %v2854_v12  ;;  %v2919_v12 = vld [vmem:[#allocation11 + $0x2d4] ss:$8 sps:$4 sm:$0xff]  }
 0x2f7   :  { %1526 = vmatprep.subr.bf16.mxu0 %v2859_v13  ;;  %v2917_v13 = vld [vmem:[#allocation11 + $0x2d0] ss:$8 sps:$4 sm:$0xff]  }
 0x2fa   :  { %1527 = vmatpush1.bf16.msra.mxu0 %v2857_v14  ;;  %v1069_v14 = vld [vmem:[#allocation13 + $0x1] ss:$4 sm:$0x3] }
 0x2fb   :  { %1528 = vmatprep.subr.bf16.mxu0 %v2862_v15  ;;  %v1074_v15 = vrot.slane %v1069_v14, %v3357_v3 }
 0x2fe   :  { %1529 = vmatpush1.bf16.msra.mxu0 %v2860_v16  ;;  %v1078_v16 = vrot.slane %v1069_v14, %v3359_v4 }
 0x2ff   :  { %1530 = vmatprep.subr.bf16.mxu0 %v2865_v34 }
 0x302   :  { %1531 = vmatpush1.bf16.msra.mxu0 %v2863_v35  ;;  %v2922_v35 = vld [vmem:[#allocation11 + $0x2e4] ss:$8 sps:$4 sm:$0xff]  }
 0x303   :  { %1532 = vmatprep.subr.bf16.mxu0 %v2868_v36  ;;  %v2923_v36 = vld [vmem:[#allocation11 + $0x2f0] ss:$8 sps:$4 sm:$0xff]  }
 0x306   :  { %1533 = vmatpush1.bf16.msra.mxu0 %v2866_v37  ;;  %v2928_v37 = vld [vmem:[#allocation8 + $0x304] ss:$8 sps:$4 sm:$0xff]  }
 0x307   :  { %1534 = vmatprep.subr.bf16.mxu0 %v2871_v38  ;;  %v2929_v38 = vld [vmem:[#allocation8 + $0x310] ss:$8 sps:$4 sm:$0xff]  }
 0x30a   :  { %1535 = vmatpush1.bf16.msra.mxu0 %v2869_v39  ;;  %v2934_v39 = vld [vmem:[#allocation8 + $0x324] ss:$8 sps:$4 sm:$0xff]  }
 0x30b   :  { %1536 = vmatprep.subr.bf16.mxu0 %v2874_v40  ;;  %v2932_v40 = vld [vmem:[#allocation8 + $0x320] ss:$8 sps:$4 sm:$0xff]  }
 0x30e   :  { %1537 = vmatpush1.bf16.msra.mxu0 %v2872_v41  ;;  %v2937_v41 = vld [vmem:[#allocation8 + $0x334] ss:$8 sps:$4 sm:$0xff]  }
 0x30f   :  { %1538 = vmatprep.subr.bf16.mxu0 %v2877_v42  ;;  %v2935_v42 = vld [vmem:[#allocation8 + $0x330] ss:$8 sps:$4 sm:$0xff]  }
 0x312   :  { %1539 = vmatpush1.bf16.msra.mxu0 %v2875_v43  ;;  %v2940_v43 = vld [vmem:[#allocation8 + $0x344] ss:$8 sps:$4 sm:$0xff]  }
 0x313   :  { %2030 = vmatprep.subr.bf16.mxu0 %v2928_v37  ;;  %v2991_v37 = vld [vmem:[#allocation11 + $0x354] ss:$8 sps:$4 sm:$0xff]  }
 0x3a8   :  { %v1020_v20 = vpop.f32.mrb[4].mxu0 }
 0x3a9   :  { %v1021_v21 = vadd.f32 %v1020_v20, %v819_v18  ;;  %v1022_v22 = vpop.f32.mrb[5].mxu0 }
 0x3aa   :  { %v1023_v23 = vadd.f32 %v1022_v22, %v823_v19  ;;  %v1024_v24 = vpop.f32.mrb[6].mxu0 }
 0x3ab   :  { %v1025_v25 = vadd.f32 %v1024_v24, %v819_v18  ;;  %v1026_v26 = vpop.f32.mrb[7].mxu0  ;;  %v1029_v28 = vmax.f32 %v1021_v21, 0.0 }
 0x3ac   :  { %v1027_v27 = vadd.f32 %v1026_v26, %v823_v19  ;;  %v1030_v30 = vmax.f32 %v1023_v23, 0.0 }
 0x3ad   :  { %v1031_v29 = vmax.f32 %v1025_v25, 0.0 }
 0x3ae   :  { %v1032_v31 = vmax.f32 %v1027_v27, 0.0 }
 0x3af   :  { %v1033_v32 = vpack.c.bf16 %v1031_v29, %v1029_v28 }
 0x3b0   :  { %v1034_v33 = vpack.c.bf16 %v1032_v31, %v1030_v30 }
 0x3b2   :  { %1273 = vmatprep.mubr.bf16.mxu1 %v1034_v33 }
 0x3b3   :  { %1274 = vmatmul.mubr.bf16.vlgmr.msra.gmra.mrb[4].mxu1 %v1033_v32 }
 0x3b4   :  { %1764 = vmatpush1.bf16.msra.mxu1 %v2878_v44  ;;  %v2938_v44 = vld [vmem:[#allocation8 + $0x340] ss:$8 sps:$4 sm:$0xff]  }
 0x3b5   :  { %1765 = vmatprep.subr.bf16.mxu1 %v2883_v46  ;;  %v2941_v46 = vld [vmem:[#allocation8 + $0x350] ss:$8 sps:$4 sm:$0xff]  }
 0x3b8   :  { %1766 = vmatpush1.bf16.msra.mxu1 %v2881_v51  ;;  %v2946_v51 = vld [vmem:[#allocation8 + $0x364] ss:$8 sps:$4 sm:$0xff]  }
 0x3b9   :  { %1767 = vmatprep.subr.bf16.mxu1 %v2886_v58  ;;  %v2944_v58 = vld [vmem:[#allocation8 + $0x360] ss:$8 sps:$4 sm:$0xff]  }
 0x3bc   :  { %1768 = vmatpush1.bf16.msra.mxu1 %v2884_v62  ;;  %v2949_v62 = vld [vmem:[#allocation8 + $0x374] ss:$8 sps:$4 sm:$0xff]  }
 0x3bd   :  { %1769 = vmatprep.subr.bf16.mxu1 %v2889_v57  ;;  %v2947_v57 = vld [vmem:[#allocation8 + $0x370] ss:$8 sps:$4 sm:$0xff]  }
 0x3c0   :  { %1770 = vmatpush1.bf16.msra.mxu1 %v2887_v61  ;;  %v2952_v61 = vld [vmem:[#allocation8 + $0x384] ss:$8 sps:$4 sm:$0xff]  }
 0x3c1   :  { %1771 = vmatprep.subr.bf16.mxu1 %v2892_v59  ;;  %v2950_v59 = vld [vmem:[#allocation8 + $0x380] ss:$8 sps:$4 sm:$0xff]  }
 0x3c4   :  { %1772 = vmatpush1.bf16.msra.mxu1 %v2890_v63  ;;  %v2955_v63 = vld [vmem:[#allocation8 + $0x394] ss:$8 sps:$4 sm:$0xff]  }
 0x3c5   :  { %1773 = vmatprep.subr.bf16.mxu1 %v2895_v56  ;;  %v2953_v56 = vld [vmem:[#allocation8 + $0x390] ss:$8 sps:$4 sm:$0xff]  }
 0x3c8   :  { %1774 = vmatpush1.bf16.msra.mxu1 %v2893_v60  ;;  %v2958_v60 = vld [vmem:[#allocation8 + $0x3a4] ss:$8 sps:$4 sm:$0xff]  }
 0x3c9   :  { %1775 = vmatprep.subr.bf16.mxu1 %v2898_v52  ;;  %v2956_v52 = vld [vmem:[#allocation8 + $0x3a0] ss:$8 sps:$4 sm:$0xff]  }
 0x3cc   :  { %1776 = vmatpush1.bf16.msra.mxu1 %v2896_v53  ;;  %v1336_v53 = vld [vmem:[#allocation10 + $0x2] ss:$4 sm:$0x3] }
 0x3cd   :  { %1777 = vmatprep.subr.bf16.mxu1 %v2901_v54  ;;  %v1341_v54 = vrot.slane %v1336_v53, %v3357_v3 }
 0x3d0   :  { %1778 = vmatpush1.bf16.msra.mxu1 %v2899_v55  ;;  %v1345_v55 = vrot.slane %v1336_v53, %v3359_v4 }
 0x3d1   :  { %1779 = vmatprep.subr.bf16.mxu1 %v2904_v0 }
 0x3d4   :  { %1780 = vmatpush1.bf16.msra.mxu1 %v2902_v1 }
 0x3d5   :  { %1781 = vmatprep.subr.bf16.mxu1 %v2907_v2 }
 0x3d8   :  { %1782 = vmatpush1.bf16.msra.mxu1 %v2905_v5 }
 0x3d9   :  { %1783 = vmatprep.subr.bf16.mxu1 %v2910_v6 }
 0x3dc   :  { %1784 = vmatpush1.bf16.msra.mxu1 %v2908_v7 }
 0x3dd   :  { %1785 = vmatprep.subr.bf16.mxu1 %v2913_v8 }
 0x3e0   :  { %1786 = vmatpush1.bf16.msra.mxu1 %v2911_v9 }
 0x3e1   :  { %1787 = vmatprep.subr.bf16.mxu1 %v2916_v10 }
 0x3e4   :  { %1788 = vmatpush1.bf16.msra.mxu1 %v2914_v11 }
 0x3e5   :  { %1789 = vmatprep.subr.bf16.mxu1 %v2919_v12 }
 0x3e8   :  { %1790 = vmatpush1.bf16.msra.mxu1 %v2917_v13 }
 0x3e9   :  { %1791 = vmatprep.subr.bf16.mxu1 %v2922_v35  ;;  %v2980_v35 = vld [vmem:[#allocation11 + $0x320] ss:$8 sps:$4 sm:$0xff]  }
 0x486   :  { %v1275_v17 = vpop.f32.mrb[4].mxu1 }
 0x487   :  { %v1276_v18 = vadd.f32 %v1275_v17, %v1074_v15  ;;  %v1277_v19 = vpop.f32.mrb[5].mxu1  ;;  %v2959_v17 = vld [vmem:[#allocation8 + $0x3b0] ss:$8 sps:$4 sm:$0xff]  }
 0x488   :  { %v1278_v20 = vadd.f32 %v1277_v19, %v1078_v16  ;;  %v1279_v21 = vpop.f32.mrb[6].mxu1  ;;  %v2962_v19 = vld [vmem:[#allocation8 + $0x3c0] ss:$8 sps:$4 sm:$0xff]  }
 0x489   :  { %v1280_v22 = vadd.f32 %v1279_v21, %v1074_v15  ;;  %v1281_v23 = vpop.f32.mrb[7].mxu1  ;;  %v1284_v26 = vmax.f32 %v1276_v18, 0.0  ;;  %v2964_v18 = vld [vmem:[#allocation8 + $0x3c4] ss:$8 sps:$4 sm:$0xff]   ;;  %v2965_v21 = vld [vmem:[#allocation8 + $0x3d0] ss:$8 sps:$4 sm:$0xff]  }
 0x48a   :  { %v1285_v24 = vmax.f32 %v1278_v20, 0.0  ;;  %v1282_v25 = vadd.f32 %v1281_v23, %v1078_v16  ;;  %v2961_v16 = vld [vmem:[#allocation8 + $0x3b4] ss:$8 sps:$4 sm:$0xff]   ;;  %v2968_v23 = vld [vmem:[#allocation8 + $0x3e0] ss:$8 sps:$4 sm:$0xff]  }
 0x48b   :  { %v1286_v27 = vmax.f32 %v1280_v22, 0.0  ;;  %v3429_v32 = vadd.f32 %v1284_v26, %v3409_v50  ;;  %v2931_v50 = vld [vmem:[#allocation8 + $0x314] ss:$8 sps:$4 sm:$0xff]   ;;  %v2970_v22 = vld [vmem:[#allocation8 + $0x3e4] ss:$8 sps:$4 sm:$0xff]  }
 0x48c   :  { %v1287_v28 = vmax.f32 %v1282_v25, 0.0  ;;  %v3423_v30 = vadd.f32 %v1285_v24, %v3401_v48  ;;  %v2925_v48 = vld [vmem:[#allocation11 + $0x2f4] ss:$8 sps:$4 sm:$0xff]   ;;  %v2971_v25 = vld [vmem:[#allocation8 + $0x3f0] ss:$8 sps:$4 sm:$0xff]  }
 0x48d   :  { %v3420_v29 = vadd.f32 %v1286_v27, %v3397_v47  ;;  %v2920_v47 = vld [vmem:[#allocation11 + $0x2e0] ss:$8 sps:$4 sm:$0xff]   ;;  %v2967_v20 = vld [vmem:[#allocation8 + $0x3d4] ss:$8 sps:$4 sm:$0xff]  }
 0x48e   :  { %v3426_v31 = vadd.f32 %v1287_v28, %v3405_v49  ;;  %1792 = vmatpush1.bf16.msra.mxu1 %v2920_v47  ;;  %v2926_v49 = vld [vmem:[#allocation8 + $0x300] ss:$8 sps:$4 sm:$0xff]   ;;  %v2973_v24 = vld [vmem:[#allocation8 + $0x3f4] ss:$8 sps:$4 sm:$0xff]  }
 0x48f   :  { %v1300_v34 = vpack.c.bf16 %v3420_v29, %v3429_v32  ;;  %1793 = vmatprep.subr.bf16.mxu1 %v2925_v48  ;;  %v2974_v26 = vld [vmem:[#allocation11 + $0x300] ss:$8 sps:$4 sm:$0xff]   ;;  %v2976_v27 = vld [vmem:[#allocation11 + $0x304] ss:$8 sps:$4 sm:$0xff]   ;;  %v2979_v28 = vld [vmem:[#allocation11 + $0x314] ss:$8 sps:$4 sm:$0xff]  }
 0x490   :  { %v1301_v33 = vpack.c.bf16 %v3426_v31, %v3423_v30  ;;  %v2985_v47 = vld [vmem:[#allocation11 + $0x334] ss:$8 sps:$4 sm:$0xff]   ;;  %v2983_v48 = vld [vmem:[#allocation11 + $0x330] ss:$8 sps:$4 sm:$0xff]  }
 0x492   :  { %1540 = vmatprep.mubr.bf16.mxu0 %v1301_v33  ;;  %1794 = vmatpush1.bf16.msra.mxu1 %v2923_v36  ;;  %v2977_v33 = vld [vmem:[#allocation11 + $0x310] ss:$8 sps:$4 sm:$0xff]   ;;  %v2988_v36 = vld [vmem:[#allocation11 + $0x344] ss:$8 sps:$4 sm:$0xff]  }
 0x493   :  { %1541 = vmatmul.mubr.bf16.vlgmr.msra.gmra.mrb[8].mxu0 %v1300_v34  ;;  %2285 = vmatprep.subr.bf16.mxu1 %v2976_v27  ;;  %v2982_v34 = vld [vmem:[#allocation11 + $0x324] ss:$8 sps:$4 sm:$0xff]  }
 0x494   :  { %2031 = vmatpush1.bf16.msra.mxu0 %v2926_v49  ;;  %v2986_v49 = vld [vmem:[#allocation11 + $0x340] ss:$8 sps:$4 sm:$0xff]  }
 0x495   :  { %2032 = vmatprep.subr.bf16.mxu0 %v2931_v50  ;;  %v2989_v50 = vld [vmem:[#allocation11 + $0x350] ss:$8 sps:$4 sm:$0xff]  }
 0x498   :  { %2033 = vmatpush1.bf16.msra.mxu0 %v2929_v38  ;;  %v2994_v38 = vld [vmem:[#allocation11 + $0x364] ss:$8 sps:$4 sm:$0xff]  }
 0x499   :  { %2034 = vmatprep.subr.bf16.mxu0 %v2934_v39  ;;  %v2992_v39 = vld [vmem:[#allocation11 + $0x360] ss:$8 sps:$4 sm:$0xff]  }
 0x49c   :  { %2035 = vmatpush1.bf16.msra.mxu0 %v2932_v40  ;;  %v2997_v40 = vld [vmem:[#allocation11 + $0x374] ss:$8 sps:$4 sm:$0xff]  }
 0x49d   :  { %2036 = vmatprep.subr.bf16.mxu0 %v2937_v41  ;;  %v2995_v41 = vld [vmem:[#allocation11 + $0x370] ss:$8 sps:$4 sm:$0xff]  }
 0x4a0   :  { %2037 = vmatpush1.bf16.msra.mxu0 %v2935_v42  ;;  %v3000_v42 = vld [vmem:[#allocation11 + $0x384] ss:$8 sps:$4 sm:$0xff]  }
 0x4a1   :  { %2038 = vmatprep.subr.bf16.mxu0 %v2940_v43  ;;  %v2998_v43 = vld [vmem:[#allocation11 + $0x380] ss:$8 sps:$4 sm:$0xff]  }
 0x4a4   :  { %2039 = vmatpush1.bf16.msra.mxu0 %v2938_v44  ;;  %v3003_v44 = vld [vmem:[#allocation11 + $0x394] ss:$8 sps:$4 sm:$0xff]  }
 0x4a5   :  { %2040 = vmatprep.subr.bf16.mxu0 %v2943_v45  ;;  %v3001_v45 = vld [vmem:[#allocation11 + $0x390] ss:$8 sps:$4 sm:$0xff]  }
 0x4a8   :  { %2041 = vmatpush1.bf16.msra.mxu0 %v2941_v46  ;;  %v3006_v46 = vld [vmem:[#allocation11 + $0x3a4] ss:$8 sps:$4 sm:$0xff]  }
 0x4a9   :  { %2042 = vmatprep.subr.bf16.mxu0 %v2946_v51  ;;  %v3004_v51 = vld [vmem:[#allocation11 + $0x3a0] ss:$8 sps:$4 sm:$0xff]  }
 0x4ac   :  { %2043 = vmatpush1.bf16.msra.mxu0 %v2944_v58  ;;  %v3009_v58 = vld [vmem:[#allocation11 + $0x3b4] ss:$8 sps:$4 sm:$0xff]  }
 0x4ad   :  { %2044 = vmatprep.subr.bf16.mxu0 %v2949_v62  ;;  %v3007_v62 = vld [vmem:[#allocation11 + $0x3b0] ss:$8 sps:$4 sm:$0xff]  }
 0x4b0   :  { %2045 = vmatpush1.bf16.msra.mxu0 %v2947_v57  ;;  %v3012_v57 = vld [vmem:[#allocation11 + $0x3c4] ss:$8 sps:$4 sm:$0xff]  }
 0x4b1   :  { %2046 = vmatprep.subr.bf16.mxu0 %v2952_v61  ;;  %v3010_v61 = vld [vmem:[#allocation11 + $0x3c0] ss:$8 sps:$4 sm:$0xff]  }
 0x4b4   :  { %2047 = vmatpush1.bf16.msra.mxu0 %v2950_v59  ;;  %v3015_v59 = vld [vmem:[#allocation11 + $0x3d4] ss:$8 sps:$4 sm:$0xff]  }
 0x4b5   :  { %2048 = vmatprep.subr.bf16.mxu0 %v2955_v63  ;;  %v3013_v63 = vld [vmem:[#allocation11 + $0x3d0] ss:$8 sps:$4 sm:$0xff]  }
 0x4b8   :  { %2049 = vmatpush1.bf16.msra.mxu0 %v2953_v56  ;;  %v1591_v56 = vld [vmem:[#allocation13 + $0x2] ss:$4 sm:$0x3] }
 0x4b9   :  { %2050 = vmatprep.subr.bf16.mxu0 %v2958_v60  ;;  %v1596_v60 = vrot.slane %v1591_v56, %v3357_v3 }
 0x4bc   :  { %2051 = vmatpush1.bf16.msra.mxu0 %v2956_v52  ;;  %v1600_v52 = vrot.slane %v1591_v56, %v3359_v4 }
 0x4bd   :  { %2052 = vmatprep.subr.bf16.mxu0 %v2961_v16 }
 0x4c0   :  { %2053 = vmatpush1.bf16.msra.mxu0 %v2959_v17  ;;  %v3018_v17 = vld [vmem:[#allocation11 + $0x3e4] ss:$8 sps:$4 sm:$0xff]  }
 0x4c1   :  { %2054 = vmatprep.subr.bf16.mxu0 %v2964_v18  ;;  %v3016_v18 = vld [vmem:[#allocation11 + $0x3e0] ss:$8 sps:$4 sm:$0xff]  }
 0x4c4   :  { %2055 = vmatpush1.bf16.msra.mxu0 %v2962_v19  ;;  %v3021_v19 = vld [vmem:[#allocation11 + $0x3f4] ss:$8 sps:$4 sm:$0xff]  }
 0x4c5   :  { %2056 = vmatprep.subr.bf16.mxu0 %v2967_v20  ;;  %v3019_v20 = vld [vmem:[#allocation11 + $0x3f0] ss:$8 sps:$4 sm:$0xff]  }
 0x4c8   :  { %2057 = vmatpush1.bf16.msra.mxu0 %v2965_v21  ;;  %v1858_v21 = vld [vmem:[#allocation10 + $0x3] ss:$4 sm:$0x3] }
 0x4c9   :  { %2058 = vmatprep.subr.bf16.mxu0 %v2970_v22 }
 0x4cc   :  { %2059 = vmatpush1.bf16.msra.mxu0 %v2968_v23 }
 0x4cd   :  { %2060 = vmatprep.subr.bf16.mxu0 %v2973_v24 }
 0x4d0   :  { %2061 = vmatpush1.bf16.msra.mxu0 %v2971_v25 }
 0x566   :  { %v1542_v0 = vpop.f32.mrb[8].mxu0 }
 0x567   :  { %v1543_v1 = vadd.f32 %v1542_v0, %v1341_v54  ;;  %v1544_v2 = vpop.f32.mrb[9].mxu0 }
 0x568   :  { %v1545_v5 = vadd.f32 %v1544_v2, %v1345_v55  ;;  %v1546_v6 = vpop.f32.mrb[10].mxu0 }
 0x569   :  { %v1547_v7 = vadd.f32 %v1546_v6, %v1341_v54  ;;  %v1548_v8 = vpop.f32.mrb[11].mxu0  ;;  %v1551_v10 = vmax.f32 %v1543_v1, 0.0 }
 0x56a   :  { %v1549_v9 = vadd.f32 %v1548_v8, %v1345_v55  ;;  %v1552_v12 = vmax.f32 %v1545_v5, 0.0 }
 0x56b   :  { %v1553_v11 = vmax.f32 %v1547_v7, 0.0 }
 0x56c   :  { %v1554_v13 = vmax.f32 %v1549_v9, 0.0 }
 0x56d   :  { %v1555_v14 = vpack.c.bf16 %v1553_v11, %v1551_v10 }
 0x56e   :  { %v1556_v15 = vpack.c.bf16 %v1554_v13, %v1552_v12 }
 0x570   :  { %1795 = vmatprep.mubr.bf16.mxu1 %v1556_v15 }
 0x571   :  { %1796 = vmatmul.mubr.bf16.vlgmr.msra.gmra.mrb[8].mxu1 %v1555_v14 }
 0x572   :  { %2286 = vmatpush1.bf16.msra.mxu1 %v2974_v26 }
 0x573   :  { %2287 = vmatprep.subr.bf16.mxu1 %v2979_v28 }
 0x576   :  { %2288 = vmatpush1.bf16.msra.mxu1 %v2977_v33 }
 0x577   :  { %2289 = vmatprep.subr.bf16.mxu1 %v2982_v34 }
 0x57a   :  { %2290 = vmatpush1.bf16.msra.mxu1 %v2980_v35 }
 0x57b   :  { %2291 = vmatprep.subr.bf16.mxu1 %v2985_v47 }
 0x57e   :  { %2292 = vmatpush1.bf16.msra.mxu1 %v2983_v48 }
 0x57f   :  { %2293 = vmatprep.subr.bf16.mxu1 %v2988_v36  ;;  %v2113_v36 = vld [vmem:[#allocation13 + $0x3] ss:$4 sm:$0x3] }
 0x582   :  { %2294 = vmatpush1.bf16.msra.mxu1 %v2986_v49  ;;  %v2118_v49 = vrot.slane %v2113_v36, %v3357_v3 }
 0x583   :  { %2295 = vmatprep.subr.bf16.mxu1 %v2991_v37  ;;  %v2122_v37 = vrot.slane %v2113_v36, %v3359_v4 }
 0x586   :  { %2296 = vmatpush1.bf16.msra.mxu1 %v2989_v50 }
 0x587   :  { %2297 = vmatprep.subr.bf16.mxu1 %v2994_v38 }
 0x58a   :  { %2298 = vmatpush1.bf16.msra.mxu1 %v2992_v39 }
 0x58b   :  { %2299 = vmatprep.subr.bf16.mxu1 %v2997_v40 }
 0x58e   :  { %2300 = vmatpush1.bf16.msra.mxu1 %v2995_v41 }
 0x58f   :  { %2301 = vmatprep.subr.bf16.mxu1 %v3000_v42 }
 0x592   :  { %2302 = vmatpush1.bf16.msra.mxu1 %v2998_v43 }
 0x593   :  { %2303 = vmatprep.subr.bf16.mxu1 %v3003_v44 }
 0x596   :  { %2304 = vmatpush1.bf16.msra.mxu1 %v3001_v45 }
 0x597   :  { %2305 = vmatprep.subr.bf16.mxu1 %v3006_v46 }
 0x59a   :  { %2306 = vmatpush1.bf16.msra.mxu1 %v3004_v51 }
 0x59b   :  { %2307 = vmatprep.subr.bf16.mxu1 %v3009_v58 }
 0x59e   :  { %2308 = vmatpush1.bf16.msra.mxu1 %v3007_v62 }
 0x59f   :  { %2309 = vmatprep.subr.bf16.mxu1 %v3012_v57 }
 0x5a2   :  { %2310 = vmatpush1.bf16.msra.mxu1 %v3010_v61 }
 0x5a3   :  { %2311 = vmatprep.subr.bf16.mxu1 %v3015_v59 }
 0x5a6   :  { %2312 = vmatpush1.bf16.msra.mxu1 %v3013_v63 }
 0x5a7   :  { %2313 = vmatprep.subr.bf16.mxu1 %v3018_v17 }
 0x5aa   :  { %2314 = vmatpush1.bf16.msra.mxu1 %v3016_v18 }
 0x5ab   :  { %2315 = vmatprep.subr.bf16.mxu1 %v3021_v19 }
 0x5ae   :  { %2316 = vmatpush1.bf16.msra.mxu1 %v3019_v20 }
 0x644   :  { %v1797_v53 = vpop.f32.mrb[8].mxu1 }
 0x645   :  { %v1798_v54 = vadd.f32 %v1797_v53, %v1596_v60  ;;  %v1799_v55 = vpop.f32.mrb[9].mxu1 }
 0x646   :  { %v1800_v0 = vadd.f32 %v1799_v55, %v1600_v52  ;;  %v1801_v1 = vpop.f32.mrb[10].mxu1 }
 0x647   :  { %v1802_v2 = vadd.f32 %v1801_v1, %v1596_v60  ;;  %v1803_v5 = vpop.f32.mrb[11].mxu1  ;;  %v1806_v8 = vmax.f32 %v1798_v54, 0.0 }
 0x648   :  { %v1807_v6 = vmax.f32 %v1800_v0, 0.0  ;;  %v1804_v7 = vadd.f32 %v1803_v5, %v1600_v52 }
 0x649   :  { %v1808_v9 = vmax.f32 %v1802_v2, 0.0  ;;  %v1810_v14 = vadd.f32 %v1806_v8, %v3429_v32 }
 0x64a   :  { %v1809_v10 = vmax.f32 %v1804_v7, 0.0  ;;  %v1811_v12 = vadd.f32 %v1807_v6, %v3423_v30  ;;  %v1867_v30 = vrot.slane %v1858_v21, %v3359_v4 }
 0x64b   :  { %v1812_v11 = vadd.f32 %v1808_v9, %v3420_v29  ;;  %v1863_v29 = vrot.slane %v1858_v21, %v3357_v3 }
 0x64c   :  { %v1813_v13 = vadd.f32 %v1809_v10, %v3426_v31 }
 0x64d   :  { %v1822_v16 = vpack.c.bf16 %v1812_v11, %v1810_v14 }
 0x64e   :  { %v1823_v15 = vpack.c.bf16 %v1813_v13, %v1811_v12 }
 0x650   :  { %2062 = vmatprep.mubr.bf16.mxu0 %v1823_v15 }
 0x651   :  { %2063 = vmatmul.mubr.bf16.vlgmr.msra.gmra.mrb[12].mxu0 %v1822_v16 }
 0x724   :  { %v2064_v31 = vpop.f32.mrb[12].mxu0 }
 0x725   :  { %v2065_v22 = vadd.f32 %v2064_v31, %v1863_v29  ;;  %v2066_v32 = vpop.f32.mrb[13].mxu0 }
 0x726   :  { %v2067_v23 = vadd.f32 %v2066_v32, %v1867_v30  ;;  %v2068_v24 = vpop.f32.mrb[14].mxu0 }
 0x727   :  { %v2069_v25 = vadd.f32 %v2068_v24, %v1863_v29  ;;  %v2070_v26 = vpop.f32.mrb[15].mxu0  ;;  %v2073_v28 = vmax.f32 %v2065_v22, 0.0 }
 0x728   :  { %v2071_v27 = vadd.f32 %v2070_v26, %v1867_v30  ;;  %v2074_v34 = vmax.f32 %v2067_v23, 0.0 }
 0x729   :  { %v2075_v33 = vmax.f32 %v2069_v25, 0.0 }
 0x72a   :  { %v2076_v35 = vmax.f32 %v2071_v27, 0.0 }
 0x72b   :  { %v2077_v47 = vpack.c.bf16 %v2075_v33, %v2073_v28 }
 0x72c   :  { %v2078_v48 = vpack.c.bf16 %v2076_v35, %v2074_v34 }
 0x72e   :  { %2317 = vmatprep.mubr.bf16.mxu1 %v2078_v48 }
 0x72f   :  { %2318 = vmatmul.mubr.bf16.vlgmr.msra.gmra.mrb[12].mxu1 %v2077_v47 }
 0x802   :  { %v2319_v50 = vpop.f32.mrb[12].mxu1 }
 0x803   :  { %v2320_v38 = vadd.f32 %v2319_v50, %v2118_v49  ;;  %v2321_v39 = vpop.f32.mrb[13].mxu1 }
 0x804   :  { %v2322_v40 = vadd.f32 %v2321_v39, %v2122_v37  ;;  %v2323_v41 = vpop.f32.mrb[14].mxu1 }
 0x805   :  { %v2328_v42 = vmax.f32 %v2320_v38, 0.0  ;;  %v2324_v43 = vadd.f32 %v2323_v41, %v2118_v49  ;;  %v2325_v44 = vpop.f32.mrb[15].mxu1 }
 0x806   :  { %v2329_v45 = vmax.f32 %v2322_v40, 0.0  ;;  %v2326_v46 = vadd.f32 %v2325_v44, %v2122_v37 }
 0x807   :  { %v2332_v51 = vadd.f32 %v2328_v42, %v1810_v14  ;;  %v2330_v58 = vmax.f32 %v2324_v43, 0.0 }
 0x808   :  { %v2333_v62 = vadd.f32 %v2329_v45, %v1811_v12  ;;  %v2331_v57 = vmax.f32 %v2326_v46, 0.0 }
 0x809   :  { %2336 = vst [vmem:[#allocation14] sm:$0xff] %v2332_v51  ;;  %v2334_v3 = vadd.f32 %v2330_v58, %v1812_v11 }
 0x80a   :  { %2337 = vst [vmem:[#allocation14 + $0x8] sm:$0xff] %v2333_v62  ;;  %v2335_v4 = vadd.f32 %v2331_v57, %v1813_v13 }
 0x80b   :  { %2338 = vst [vmem:[#allocation14 + $0x10] sm:$0xff] %v2334_v3 }
 0x80c   :  { %2339 = vst [vmem:[#allocation14 + $0x18] sm:$0xff] %v2335_v4 }
 0x80d   :  { %3187 = shalt.err (!%p3184_p4)
}
 0x80e   :  { %s3188_s24 = scalar_lea.hbm %s3466_s7, 512 }
 0x80f   :  { %p3189_p5 = scmp.ne.s32.totalorder %s3466_s7, %s3188_s24  ;;  %p3192_p6 = scmp.lt.u32.totalorder %s3188_s24, %s3466_s7 }
 0x811   :  { %p3194_p7 = pnand %p3192_p6, %p3189_p5 }
 0x813   :  { %3197 = shalt.err (!%p3194_p7)
}
 0x814   :  { %s3222_s15 = smov 256   ;;  %s3223_s17 = smov 16  }
 0x815   :  { %2351 = dma.vmem_to_hbm [thread:$0]  %s2346_s10, 512, %s3466_s7, [#allocation4], %s3222_s15, %s3222_s15, %s3223_s17  }
 0x816   :  { %3206 = dma.done.wait [#allocation4], 512  }
 0x817   :  { %3207 = vsyncadd [#allocation4], 4294966784 }
 0x818   :  { %2355 = vsyncpa [#allocation3], 1 }
 0x819   :  { %2356 = vsyncpa [#allocation6], 1 }
 0x81a   :  { %2357 = vsyncpa [#allocation9], 1 }
 0x81b   :  { %2358 = vsyncpa [#allocation12], 1 }
 0x81c   :  { %2359 = vsyncpa [#allocation4], 1 }

</bundles_post_ra>
